<compile_context>
chip_gen: v6e
topology: v6e:2x2x1
jax: 0.10.0
libtpu: 0.0.40
codegen_flags: <defaults>
</compile_context>

<pallas_src>
import math
import functools

import jax
import jax.numpy as jnp
from jax import lax
from jax.experimental import pallas as pl
from jax.experimental.pallas import tpu as pltpu


# Row indices inside the packed (NUM_VEC, D) bias / LayerNorm slab.
_BQ, _BK, _BV, _BO, _LN1G, _LN1B, _B2, _LN2G, _LN2B = range(9)
_NUM_VEC = 9


def encoder_layer_kernel(
    x_ref,
    wq_ref, wk_ref, wv_ref, wo_ref, w1_ref, w2_ref,
    vec_ref,        # (NUM_VEC, D) f32: bq(scaled), bk, bv, bo, ln1_g, ln1_b, b2, ln2_g, ln2_b
    b1_ref,         # (1, FF) f32
    o_ref,
    *,
    seq_len,
    seqs_per_block,
):
    # TODO(synk): no attn_mask / src_key_padding_mask path (module passes none).
    x = x_ref[...]                                   # (R, D) f32, R = nb * S
    d_model = x.shape[-1]
    rows = seqs_per_block * seq_len

    vecs = vec_ref[...]                              # single consolidated DMA
    bq = vecs[_BQ:_BQ + 1, :]
    bk = vecs[_BK:_BK + 1, :]
    bv = vecs[_BV:_BV + 1, :]
    bo = vecs[_BO:_BO + 1, :]
    ln1_g = vecs[_LN1G:_LN1G + 1, :]
    ln1_b = vecs[_LN1B:_LN1B + 1, :]
    b2 = vecs[_B2:_B2 + 1, :]
    ln2_g = vecs[_LN2G:_LN2G + 1, :]
    ln2_b = vecs[_LN2B:_LN2B + 1, :]

    xb = x.astype(jnp.bfloat16)

    # ---- QKV projections over all R rows at once (bf16 in, f32 accumulate) --
    # 1/sqrt(d_model) is already folded into wq / bq (done in f32 in wrapper).
    q = jnp.dot(xb, wq_ref[...], preferred_element_type=jnp.float32) + bq
    k = jnp.dot(xb, wk_ref[...], preferred_element_type=jnp.float32) + bk
    v = jnp.dot(xb, wv_ref[...], preferred_element_type=jnp.float32) + bv

    # ---- Per-sequence attention (nhead=1, head_dim == d_model) --------------
    q3 = q.reshape(seqs_per_block, seq_len, d_model).astype(jnp.bfloat16)
    k3 = k.reshape(seqs_per_block, seq_len, d_model).astype(jnp.bfloat16)
    v3 = v.reshape(seqs_per_block, seq_len, d_model).astype(jnp.bfloat16)

    # TODO(synk): if S grows beyond ~128, project K pre-transposed ((nb,D,S))
    # to avoid the implicit contraction-operand relayout here.
    scores = jnp.einsum("bqd,bkd->bqk", q3, k3,
                        preferred_element_type=jnp.float32)        # (nb, S, S)

    m = jnp.max(scores, axis=-1, keepdims=True)
    p = jnp.exp(scores - m)
    p = p * pl.reciprocal(jnp.sum(p, axis=-1, keepdims=True), approx=True)

    ctx = jnp.einsum("bqk,bkd->bqd", p.astype(jnp.bfloat16), v3,
                     preferred_element_type=jnp.float32)           # (nb, S, D)
    ctx = ctx.reshape(rows, d_model)

    attn_out = jnp.dot(ctx.astype(jnp.bfloat16), wo_ref[...],
                       preferred_element_type=jnp.float32) + bo

    # ---- Residual + LayerNorm 1 (post-norm), f32 ----------------------------
    h = x + attn_out
    mu = jnp.mean(h, axis=-1, keepdims=True)
    var = jnp.mean((h - mu) * (h - mu), axis=-1, keepdims=True)
    h = (h - mu) * lax.rsqrt(var + 1e-5) * ln1_g + ln1_b

    # ---- Feed-forward (relu): bf16 (or fp8-stored) weights, f32 accumulate --
    w1 = w1_ref[...].astype(jnp.bfloat16)     # no-op for bf16, upcast for fp8
    w2 = w2_ref[...].astype(jnp.bfloat16)
    ff = jnp.dot(h.astype(jnp.bfloat16), w1,
                 preferred_element_type=jnp.float32) + b1_ref[...]
    ff = jnp.maximum(ff, 0.0)
    ff = jnp.dot(ff.astype(jnp.bfloat16), w2,
                 preferred_element_type=jnp.float32) + b2

    # ---- Residual + LayerNorm 2 ---------------------------------------------
    h2 = h + ff
    mu2 = jnp.mean(h2, axis=-1, keepdims=True)
    var2 = jnp.mean((h2 - mu2) * (h2 - mu2), axis=-1, keepdims=True)
    out = (h2 - mu2) * lax.rsqrt(var2 + 1e-5) * ln2_g + ln2_b

    o_ref[...] = out.astype(o_ref.dtype)


def _act_vmem_bytes(rows, S, D, FF):
    """Rough live-f32-activation bytes per grid step (dominant: (rows,FF) FFN)."""
    nb = max(rows // max(S, 1), 1)
    return rows * (FF + 12 * D) * 4 + nb * S * S * 4


def _default_seqs_per_block(B, S, D, FF, budget_bytes=20 << 20):
    """Pick sequences per grid block.

    Whole batch in one block when it fits (weights fetched exactly once for a
    weight-DMA-bound kernel; never split across TensorCores at small B).  If a
    split is forced, prefer rows that are a multiple of 256 (v6e/v7x MXU fill)
    with >=2 blocks so activation DMA pipelines against compute.  The 20 MiB
    activation budget is sized against v7x's 32 MiB scoped VMEM default.
    """
    divisors = [d for d in range(B, 0, -1) if B % d == 0]
    fitting = [d for d in divisors if _act_vmem_bytes(d * S, S, D, FF) <= budget_bytes]
    if not fitting:
        return 1
    if fitting[0] == B:
        return B
    aligned = [d for d in fitting if (d * S) % 256 == 0]
    return aligned[0] if aligned else fitting[0]


def transformer_encoder_forward(x, params, *, seqs_per_block=None,
                                ffn_weight_dtype=jnp.bfloat16):
    """x: (B, S, D) float32. One post-norm TransformerEncoderLayer (eval).

    ffn_weight_dtype: jnp.bfloat16 (default, all generations) or a fp8 dtype
    (v7x only) to halve the dominant FFN-weight HBM bytes.
    """
    B, S, D = x.shape
    FF = params["w1"].shape[1]

    if seqs_per_block is None:
        seqs_per_block = _default_seqs_per_block(B, S, D, FF)
    assert B % seqs_per_block == 0
    num_blocks = B // seqs_per_block
    rows = seqs_per_block * S
    if num_blocks > 1:
        # (8,128) sublane constraint applies when the block is not the full array.
        assert rows % 8 == 0, "seqs_per_block * S must be a multiple of 8"

    x2 = x.reshape(B * S, D)

    # Fold the softmax 1/sqrt(d_model) scale into the Q projection (in f32,
    # before any low-precision cast -> accuracy neutral).
    scale = 1.0 / math.sqrt(D)
    wq_scaled = params["wq"] * scale
    bq_scaled = params["bq"] * scale

    # Attention weights in bf16 (halves weight HBM bytes; MXU-native).
    to_bf16 = lambda a: a.astype(jnp.bfloat16)
    wq, wk, wv, wo = map(to_bf16, (wq_scaled, params["wk"], params["wv"], params["wo"]))
    # FFN weights (the bulk of the bytes): bf16 default, optional fp8 on v7x.
    w1 = params["w1"].astype(ffn_weight_dtype)
    w2 = params["w2"].astype(ffn_weight_dtype)

    # One consolidated f32 slab for every (1, D) bias / LayerNorm vector.
    vec_slab = jnp.concatenate(
        [bq_scaled, params["bk"], params["bv"], params["bo"],
         params["ln1_g"], params["ln1_b"], params["b2"],
         params["ln2_g"], params["ln2_b"]], axis=0).astype(jnp.float32)
    assert vec_slab.shape == (_NUM_VEC, D)
    b1 = params["b1"].astype(jnp.float32)            # (1, FF)

    def full_spec(shape):
        nd = len(shape)
        return pl.BlockSpec(shape, lambda i, _nd=nd: (0,) * _nd)

    grid_spec = pltpu.PrefetchScalarGridSpec(
        num_scalar_prefetch=0,
        grid=(num_blocks,),
        in_specs=[
            pl.BlockSpec((rows, D), lambda i: (i, 0)),                 # x (B*S, D)
            full_spec((D, D)), full_spec((D, D)), full_spec((D, D)),   # wq, wk, wv
            full_spec((D, D)),                                         # wo
            full_spec((D, FF)), full_spec((FF, D)),                    # w1, w2
            full_spec((_NUM_VEC, D)),                                  # bias/LN slab
            full_spec((1, FF)),                                        # b1
        ],
        out_specs=pl.BlockSpec((rows, D), lambda i: (i, 0)),
    )

    ffn_itemsize = jnp.dtype(ffn_weight_dtype).itemsize
    flops = (2 * B * S * (4 * D * D + 2 * D * FF)        # QKV/out proj + FFN
             + 4 * B * S * S * D)                        # QK^T and PV
    transcendentals = B * S * S                          # softmax exp
    bytes_accessed = (4 * D * D * 2                      # attn weights (bf16)
                      + 2 * D * FF * ffn_itemsize        # FFN weights
                      + (_NUM_VEC * D + FF) * 4          # biases + LN params (f32)
                      + 2 * B * S * D * 4)               # activations in/out (f32)
    cost = pl.CostEstimate(flops=int(flops),
                           transcendentals=int(transcendentals),
                           bytes_accessed=int(bytes_accessed))

    # Raise the scoped VMEM limit only when the estimate actually needs it
    # (double-buffered weights + activations); sized so the toy shape never
    # touches it and larger shapes stay inside v7x's 64 MiB physical VMEM.
    weight_bytes = 4 * D * D * 2 + 2 * D * FF * ffn_itemsize
    vmem_needed = (_act_vmem_bytes(rows, S, D, FF)
                   + 2 * weight_bytes                    # BlockSpec double-buffers
                   + 2 * 2 * rows * D * 4                # x / out double buffers
                   + 2 * (_NUM_VEC * D + FF) * 4)
    compiler_kwargs = {"dimension_semantics": ("parallel",)}
    if vmem_needed > (32 << 20):
        compiler_kwargs["vmem_limit_bytes"] = int(min(vmem_needed * 1.25, 100 << 20))

    kernel = functools.partial(encoder_layer_kernel,
                               seq_len=S, seqs_per_block=seqs_per_block)

    # TODO(synk): when stacking layers / repeated decode, hide the ~1.2 MB
    # weight fetch with a cross-pallas_call DMA future (P10) or keep weights
    # VMEM-resident across calls; at small B this kernel is ~90% weight DMA.
    fn = pl.pallas_call(
        kernel,
        out_shape=jax.ShapeDtypeStruct((B * S, D), x.dtype),
        grid_spec=grid_spec,
        compiler_params=pltpu.CompilerParams(**compiler_kwargs),
        cost_estimate=cost,
    )
    out = fn(x2, wq, wk, wv, wo, w1, w2, vec_slab, b1)
    return out.reshape(B, S, D)


def init_params(key, d_model, dim_feedforward):
    """Deterministic synthetic parameters matching TransformerEncoderLayer shapes."""
    ks = jax.random.split(key, 8)

    # Weights stored pre-transposed so the kernel computes x @ W (+ b),
    # matching PyTorch's x @ W.T with W of shape (out, in).
    def u(k, shape, scale):
        return jax.random.uniform(k, shape, jnp.float32, -scale, scale)

    s_d = 1.0 / math.sqrt(d_model)
    s_ff = 1.0 / math.sqrt(dim_feedforward)
    return {
        "wq": u(ks[0], (d_model, d_model), s_d),
        "wk": u(ks[1], (d_model, d_model), s_d),
        "wv": u(ks[2], (d_model, d_model), s_d),
        "bq": jnp.zeros((1, d_model), jnp.float32),
        "bk": jnp.zeros((1, d_model), jnp.float32),
        "bv": jnp.zeros((1, d_model), jnp.float32),
        "wo": u(ks[3], (d_model, d_model), s_d),
        "bo": u(ks[4], (1, d_model), s_d),
        "ln1_g": jnp.ones((1, d_model), jnp.float32),
        "ln1_b": jnp.zeros((1, d_model), jnp.float32),
        "w1": u(ks[5], (d_model, dim_feedforward), s_d),
        "b1": u(ks[6], (1, dim_feedforward), s_d),
        "w2": u(ks[7], (dim_feedforward, d_model), s_ff),
        "b2": jnp.zeros((1, d_model), jnp.float32),
        "ln2_g": jnp.ones((1, d_model), jnp.float32),
        "ln2_b": jnp.zeros((1, d_model), jnp.float32),
    }


def reference_forward(x, p):
    """Pure-JAX f32 reference of the same post-norm encoder layer (eval mode)."""
    D = x.shape[-1]
    q = x @ p["wq"] + p["bq"]
    k = x @ p["wk"] + p["bk"]
    v = x @ p["wv"] + p["bv"]
    scores = jnp.einsum("bqd,bkd->bqk", q, k) / math.sqrt(D)
    attn = jax.nn.softmax(scores, axis=-1)
    a = jnp.einsum("bqk,bkd->bqd", attn, v) @ p["wo"] + p["bo"]

    def ln(h, g, b):
        mu = h.mean(-1, keepdims=True)
        var = ((h - mu) ** 2).mean(-1, keepdims=True)
        return (h - mu) / jnp.sqrt(var + 1e-5) * g + b

    h = ln(x + a, p["ln1_g"], p["ln1_b"])
    ff = jnp.maximum(h @ p["w1"] + p["b1"], 0.0) @ p["w2"] + p["b2"]
    return ln(h + ff, p["ln2_g"], p["ln2_b"])


if __name__ == "__main__":
    # Small, module-consistent shapes: d_model=128, nhead=1, 1 encoder layer,
    # PyTorch default dim_feedforward=2048.
    B, S, D, FF = 2, 8, 128, 2048

    key = jax.random.PRNGKey(0)
    kx, kp = jax.random.split(key)
    x = jax.random.normal(kx, (B, S, D), jnp.float32)
    params = init_params(kp, D, FF)

    out = transformer_encoder_forward(x, params)
    out = jax.block_until_ready(out)

    ref = reference_forward(x, params)
    assert out.shape == (B, S, D)
    # Tolerance loosened vs f32 reference: matmul inputs are bf16 and the
    # softmax normalization uses the approx (EUP) reciprocal.
    assert jnp.allclose(out, ref, atol=3e-2, rtol=3e-2), (
        float(jnp.max(jnp.abs(out - ref))))

    print("KERNEL_OK")
</pallas_src>

<mosaic_0001>
module attributes {stable_mosaic.version = 11 : i64} {
  func.func @encoder_layer_kernel(%arg0: i32, %arg1: memref<16x128xf32, #tpu.memory_space<vmem>>, %arg2: memref<128x128xbf16, #tpu.memory_space<vmem>>, %arg3: memref<128x128xbf16, #tpu.memory_space<vmem>>, %arg4: memref<128x128xbf16, #tpu.memory_space<vmem>>, %arg5: memref<128x128xbf16, #tpu.memory_space<vmem>>, %arg6: memref<128x2048xbf16, #tpu.memory_space<vmem>>, %arg7: memref<2048x128xbf16, #tpu.memory_space<vmem>>, %arg8: memref<9x128xf32, #tpu.memory_space<vmem>>, %arg9: memref<1x2048xf32, #tpu.memory_space<vmem>>, %arg10: memref<16x128xf32, #tpu.memory_space<vmem>>) attributes {dimension_semantics = [#tpu.dimension_semantics<parallel>], iteration_bounds = array<i64: 1>, scalar_prefetch = 0 : i64, scratch_operands = 0 : i64, tpu.core_type = #tpu.core_type<tc>, window_params = [{transform_indices = @transform_0, window_bounds = array<i64: 16, 128>}, {pipeline_mode = #tpu.pipeline_mode<synchronous>, transform_indices = @transform_1, window_bounds = array<i64: 128, 128>}, {pipeline_mode = #tpu.pipeline_mode<synchronous>, transform_indices = @transform_2, window_bounds = array<i64: 128, 128>}, {pipeline_mode = #tpu.pipeline_mode<synchronous>, transform_indices = @transform_3, window_bounds = array<i64: 128, 128>}, {pipeline_mode = #tpu.pipeline_mode<synchronous>, transform_indices = @transform_4, window_bounds = array<i64: 128, 128>}, {pipeline_mode = #tpu.pipeline_mode<synchronous>, transform_indices = @transform_5, window_bounds = array<i64: 128, 2048>}, {pipeline_mode = #tpu.pipeline_mode<synchronous>, transform_indices = @transform_6, window_bounds = array<i64: 2048, 128>}, {pipeline_mode = #tpu.pipeline_mode<synchronous>, transform_indices = @transform_7, window_bounds = array<i64: 9, 128>}, {pipeline_mode = #tpu.pipeline_mode<synchronous>, transform_indices = @transform_8, window_bounds = array<i64: 1, 2048>}, {transform_indices = @transform_9, window_bounds = array<i64: 16, 128>}]} {
    %c0 = arith.constant 0 : index
    %c0_0 = arith.constant 0 : index
    %0 = vector.load %arg1[%c0, %c0_0] : memref<16x128xf32, #tpu.memory_space<vmem>>, vector<16x128xf32>
    %c0_1 = arith.constant 0 : index
    %c0_2 = arith.constant 0 : index
    %1 = vector.load %arg8[%c0_1, %c0_2] : memref<9x128xf32, #tpu.memory_space<vmem>>, vector<9x128xf32>
    %2 = vector.extract_strided_slice %1 {offsets = [0, 0], sizes = [1, 128], strides = [1, 1]} : vector<9x128xf32> to vector<1x128xf32>
    %3 = vector.extract_strided_slice %1 {offsets = [1, 0], sizes = [1, 128], strides = [1, 1]} : vector<9x128xf32> to vector<1x128xf32>
    %4 = vector.extract_strided_slice %1 {offsets = [2, 0], sizes = [1, 128], strides = [1, 1]} : vector<9x128xf32> to vector<1x128xf32>
    %5 = vector.extract_strided_slice %1 {offsets = [3, 0], sizes = [1, 128], strides = [1, 1]} : vector<9x128xf32> to vector<1x128xf32>
    %6 = vector.extract_strided_slice %1 {offsets = [4, 0], sizes = [1, 128], strides = [1, 1]} : vector<9x128xf32> to vector<1x128xf32>
    %7 = vector.extract_strided_slice %1 {offsets = [5, 0], sizes = [1, 128], strides = [1, 1]} : vector<9x128xf32> to vector<1x128xf32>
    %8 = vector.extract_strided_slice %1 {offsets = [6, 0], sizes = [1, 128], strides = [1, 1]} : vector<9x128xf32> to vector<1x128xf32>
    %9 = vector.extract_strided_slice %1 {offsets = [7, 0], sizes = [1, 128], strides = [1, 1]} : vector<9x128xf32> to vector<1x128xf32>
    %10 = vector.extract_strided_slice %1 {offsets = [8, 0], sizes = [1, 128], strides = [1, 1]} : vector<9x128xf32> to vector<1x128xf32>
    %11 = arith.truncf %0 : vector<16x128xf32> to vector<16x128xbf16>
    %c0_3 = arith.constant 0 : index
    %c0_4 = arith.constant 0 : index
    %12 = vector.load %arg2[%c0_3, %c0_4] : memref<128x128xbf16, #tpu.memory_space<vmem>>, vector<128x128xbf16>
    %cst = arith.constant dense<0.000000e+00> : vector<16x128xf32>
    %13 = tpu.matmul %11, %12, %cst {dimension_numbers = #tpu.dot_dimension_numbers<[1], [0], [0], [1], [0, 0, 1, 1], [], []>} : vector<16x128xbf16>, vector<128x128xbf16>, vector<16x128xf32> -> vector<16x128xf32>
    %14 = vector.broadcast %2 : vector<1x128xf32> to vector<16x128xf32>
    %15 = arith.addf %13, %14 : vector<16x128xf32>
    %c0_5 = arith.constant 0 : index
    %c0_6 = arith.constant 0 : index
    %16 = vector.load %arg3[%c0_5, %c0_6] : memref<128x128xbf16, #tpu.memory_space<vmem>>, vector<128x128xbf16>
    %cst_7 = arith.constant dense<0.000000e+00> : vector<16x128xf32>
    %17 = tpu.matmul %11, %16, %cst_7 {dimension_numbers = #tpu.dot_dimension_numbers<[1], [0], [0], [1], [0, 0, 1, 1], [], []>} : vector<16x128xbf16>, vector<128x128xbf16>, vector<16x128xf32> -> vector<16x128xf32>
    %18 = vector.broadcast %3 : vector<1x128xf32> to vector<16x128xf32>
    %19 = arith.addf %17, %18 : vector<16x128xf32>
    %c0_8 = arith.constant 0 : index
    %c0_9 = arith.constant 0 : index
    %20 = vector.load %arg4[%c0_8, %c0_9] : memref<128x128xbf16, #tpu.memory_space<vmem>>, vector<128x128xbf16>
    %cst_10 = arith.constant dense<0.000000e+00> : vector<16x128xf32>
    %21 = tpu.matmul %11, %20, %cst_10 {dimension_numbers = #tpu.dot_dimension_numbers<[1], [0], [0], [1], [0, 0, 1, 1], [], []>} : vector<16x128xbf16>, vector<128x128xbf16>, vector<16x128xf32> -> vector<16x128xf32>
    %22 = vector.broadcast %4 : vector<1x128xf32> to vector<16x128xf32>
    %23 = arith.addf %21, %22 : vector<16x128xf32>
    %24 = vector.shape_cast %15 : vector<16x128xf32> to vector<2x8x128xf32>
    %25 = arith.truncf %24 : vector<2x8x128xf32> to vector<2x8x128xbf16>
    %26 = vector.shape_cast %19 : vector<16x128xf32> to vector<2x8x128xf32>
    %27 = arith.truncf %26 : vector<2x8x128xf32> to vector<2x8x128xbf16>
    %28 = vector.shape_cast %23 : vector<16x128xf32> to vector<2x8x128xf32>
    %29 = arith.truncf %28 : vector<2x8x128xf32> to vector<2x8x128xbf16>
    "tpu.trace_start"() <{level = 10 : i32, message = "bqd,bkd->bqk"}> : () -> ()
    %cst_11 = arith.constant dense<0.000000e+00> : vector<2x8x8xf32>
    %30 = tpu.matmul %25, %27, %cst_11 {dimension_numbers = #tpu.dot_dimension_numbers<[2], [2], [1], [1], [0, 0, 0, 1, 1, 1], [0], [0]>} : vector<2x8x128xbf16>, vector<2x8x128xbf16>, vector<2x8x8xf32> -> vector<2x8x8xf32>
    "tpu.trace_stop"() : () -> ()
    %cst_12 = arith.constant dense<0xFF800000> : vector<2x8xf32>
    %31 = vector.multi_reduction <maximumf>, %30, %cst_12 [2] : vector<2x8x8xf32> to vector<2x8xf32>
    %32 = vector.shape_cast %31 : vector<2x8xf32> to vector<2x8x1xf32>
    %33 = vector.broadcast %32 : vector<2x8x1xf32> to vector<2x8x8xf32>
    %34 = arith.subf %30, %33 : vector<2x8x8xf32>
    %35 = math.exp %34 : vector<2x8x8xf32>
    %cst_13 = arith.constant dense<0.000000e+00> : vector<2x8xf32>
    %36 = vector.multi_reduction <add>, %35, %cst_13 [2] : vector<2x8x8xf32> to vector<2x8xf32>
    %37 = vector.shape_cast %36 : vector<2x8xf32> to vector<2x8x1xf32>
    %38 = tpu.reciprocal %37 {approx = true} : vector<2x8x1xf32> -> vector<2x8x1xf32>
    %39 = vector.broadcast %38 : vector<2x8x1xf32> to vector<2x8x8xf32>
    %40 = arith.mulf %35, %39 : vector<2x8x8xf32>
    %41 = arith.truncf %40 : vector<2x8x8xf32> to vector<2x8x8xbf16>
    "tpu.trace_start"() <{level = 10 : i32, message = "bqk,bkd->bqd"}> : () -> ()
    %cst_14 = arith.constant dense<0.000000e+00> : vector<2x8x128xf32>
    %42 = tpu.matmul %41, %29, %cst_14 {dimension_numbers = #tpu.dot_dimension_numbers<[2], [1], [1], [2], [0, 0, 0, 1, 1, 2], [0], [0]>} : vector<2x8x8xbf16>, vector<2x8x128xbf16>, vector<2x8x128xf32> -> vector<2x8x128xf32>
    "tpu.trace_stop"() : () -> ()
    %43 = vector.shape_cast %42 : vector<2x8x128xf32> to vector<16x128xf32>
    %44 = arith.truncf %43 : vector<16x128xf32> to vector<16x128xbf16>
    %c0_15 = arith.constant 0 : index
    %c0_16 = arith.constant 0 : index
    %45 = vector.load %arg5[%c0_15, %c0_16] : memref<128x128xbf16, #tpu.memory_space<vmem>>, vector<128x128xbf16>
    %cst_17 = arith.constant dense<0.000000e+00> : vector<16x128xf32>
    %46 = tpu.matmul %44, %45, %cst_17 {dimension_numbers = #tpu.dot_dimension_numbers<[1], [0], [0], [1], [0, 0, 1, 1], [], []>} : vector<16x128xbf16>, vector<128x128xbf16>, vector<16x128xf32> -> vector<16x128xf32>
    %47 = vector.broadcast %5 : vector<1x128xf32> to vector<16x128xf32>
    %48 = arith.addf %46, %47 : vector<16x128xf32>
    %49 = arith.addf %0, %48 : vector<16x128xf32>
    %cst_18 = arith.constant dense<0.000000e+00> : vector<16xf32>
    %50 = vector.multi_reduction <add>, %49, %cst_18 [1] : vector<16x128xf32> to vector<16xf32>
    %51 = vector.shape_cast %50 : vector<16xf32> to vector<16x1xf32>
    %cst_19 = arith.constant 1.280000e+02 : f32
    %52 = vector.broadcast %cst_19 : f32 to vector<16x1xf32>
    %53 = arith.divf %51, %52 : vector<16x1xf32>
    %54 = vector.broadcast %53 : vector<16x1xf32> to vector<16x128xf32>
    %55 = arith.subf %49, %54 : vector<16x128xf32>
    %56 = vector.broadcast %53 : vector<16x1xf32> to vector<16x128xf32>
    %57 = arith.subf %49, %56 : vector<16x128xf32>
    %58 = arith.mulf %55, %57 : vector<16x128xf32>
    %cst_20 = arith.constant dense<0.000000e+00> : vector<16xf32>
    %59 = vector.multi_reduction <add>, %58, %cst_20 [1] : vector<16x128xf32> to vector<16xf32>
    %60 = vector.shape_cast %59 : vector<16xf32> to vector<16x1xf32>
    %cst_21 = arith.constant 1.280000e+02 : f32
    %61 = vector.broadcast %cst_21 : f32 to vector<16x1xf32>
    %62 = arith.divf %60, %61 : vector<16x1xf32>
    %63 = vector.broadcast %53 : vector<16x1xf32> to vector<16x128xf32>
    %64 = arith.subf %49, %63 : vector<16x128xf32>
    %cst_22 = arith.constant 9.99999974E-6 : f32
    %65 = vector.broadcast %cst_22 : f32 to vector<16x1xf32>
    %66 = arith.addf %62, %65 : vector<16x1xf32>
    %67 = math.rsqrt %66 : vector<16x1xf32>
    %68 = vector.broadcast %67 : vector<16x1xf32> to vector<16x128xf32>
    %69 = arith.mulf %64, %68 : vector<16x128xf32>
    %70 = vector.broadcast %6 : vector<1x128xf32> to vector<16x128xf32>
    %71 = arith.mulf %69, %70 : vector<16x128xf32>
    %72 = vector.broadcast %7 : vector<1x128xf32> to vector<16x128xf32>
    %73 = arith.addf %71, %72 : vector<16x128xf32>
    %c0_23 = arith.constant 0 : index
    %c0_24 = arith.constant 0 : index
    %74 = vector.load %arg6[%c0_23, %c0_24] : memref<128x2048xbf16, #tpu.memory_space<vmem>>, vector<128x2048xbf16>
    %c0_25 = arith.constant 0 : index
    %c0_26 = arith.constant 0 : index
    %75 = vector.load %arg7[%c0_25, %c0_26] : memref<2048x128xbf16, #tpu.memory_space<vmem>>, vector<2048x128xbf16>
    %76 = arith.truncf %73 : vector<16x128xf32> to vector<16x128xbf16>
    %cst_27 = arith.constant dense<0.000000e+00> : vector<16x2048xf32>
    %77 = tpu.matmul %76, %74, %cst_27 {dimension_numbers = #tpu.dot_dimension_numbers<[1], [0], [0], [1], [0, 0, 1, 1], [], []>} : vector<16x128xbf16>, vector<128x2048xbf16>, vector<16x2048xf32> -> vector<16x2048xf32>
    %c0_28 = arith.constant 0 : index
    %c0_29 = arith.constant 0 : index
    %78 = vector.load %arg9[%c0_28, %c0_29] : memref<1x2048xf32, #tpu.memory_space<vmem>>, vector<1x2048xf32>
    %79 = vector.broadcast %78 : vector<1x2048xf32> to vector<16x2048xf32>
    %80 = arith.addf %77, %79 : vector<16x2048xf32>
    %cst_30 = arith.constant 0.000000e+00 : f32
    %81 = vector.broadcast %cst_30 : f32 to vector<16x2048xf32>
    %82 = arith.maximumf %80, %81 : vector<16x2048xf32>
    %83 = arith.truncf %82 : vector<16x2048xf32> to vector<16x2048xbf16>
    %cst_31 = arith.constant dense<0.000000e+00> : vector<16x128xf32>
    %84 = tpu.matmul %83, %75, %cst_31 {dimension_numbers = #tpu.dot_dimension_numbers<[1], [0], [0], [1], [0, 0, 1, 1], [], []>} : vector<16x2048xbf16>, vector<2048x128xbf16>, vector<16x128xf32> -> vector<16x128xf32>
    %85 = vector.broadcast %8 : vector<1x128xf32> to vector<16x128xf32>
    %86 = arith.addf %84, %85 : vector<16x128xf32>
    %87 = arith.addf %73, %86 : vector<16x128xf32>
    %cst_32 = arith.constant dense<0.000000e+00> : vector<16xf32>
    %88 = vector.multi_reduction <add>, %87, %cst_32 [1] : vector<16x128xf32> to vector<16xf32>
    %89 = vector.shape_cast %88 : vector<16xf32> to vector<16x1xf32>
    %cst_33 = arith.constant 1.280000e+02 : f32
    %90 = vector.broadcast %cst_33 : f32 to vector<16x1xf32>
    %91 = arith.divf %89, %90 : vector<16x1xf32>
    %92 = vector.broadcast %91 : vector<16x1xf32> to vector<16x128xf32>
    %93 = arith.subf %87, %92 : vector<16x128xf32>
    %94 = vector.broadcast %91 : vector<16x1xf32> to vector<16x128xf32>
    %95 = arith.subf %87, %94 : vector<16x128xf32>
    %96 = arith.mulf %93, %95 : vector<16x128xf32>
    %cst_34 = arith.constant dense<0.000000e+00> : vector<16xf32>
    %97 = vector.multi_reduction <add>, %96, %cst_34 [1] : vector<16x128xf32> to vector<16xf32>
    %98 = vector.shape_cast %97 : vector<16xf32> to vector<16x1xf32>
    %cst_35 = arith.constant 1.280000e+02 : f32
    %99 = vector.broadcast %cst_35 : f32 to vector<16x1xf32>
    %100 = arith.divf %98, %99 : vector<16x1xf32>
    %101 = vector.broadcast %91 : vector<16x1xf32> to vector<16x128xf32>
    %102 = arith.subf %87, %101 : vector<16x128xf32>
    %cst_36 = arith.constant 9.99999974E-6 : f32
    %103 = vector.broadcast %cst_36 : f32 to vector<16x1xf32>
    %104 = arith.addf %100, %103 : vector<16x1xf32>
    %105 = math.rsqrt %104 : vector<16x1xf32>
    %106 = vector.broadcast %105 : vector<16x1xf32> to vector<16x128xf32>
    %107 = arith.mulf %102, %106 : vector<16x128xf32>
    %108 = vector.broadcast %9 : vector<1x128xf32> to vector<16x128xf32>
    %109 = arith.mulf %107, %108 : vector<16x128xf32>
    %110 = vector.broadcast %10 : vector<1x128xf32> to vector<16x128xf32>
    %111 = arith.addf %109, %110 : vector<16x128xf32>
    %c0_37 = arith.constant 0 : index
    %c0_38 = arith.constant 0 : index
    %112 = vector.load %arg10[%c0_37, %c0_38] : memref<16x128xf32, #tpu.memory_space<vmem>>, vector<16x128xf32>
    tpu.vector_store %arg10[%c0_37, %c0_38], %111 {strides = array<i32>} : memref<16x128xf32, #tpu.memory_space<vmem>>, vector<16x128xf32>,
    return
  }
  func.func @transform_0(%arg0: i32) -> (i32, i32) {
    %c0_i32 = arith.constant 0 : i32
    %c0_i32_0 = arith.constant 0 : i32
    return %arg0, %c0_i32 : i32, i32
  }
  func.func @transform_1(%arg0: i32) -> (i32, i32) {
    %c0_i32 = arith.constant 0 : i32
    %c0_i32_0 = arith.constant 0 : i32
    %c0_i32_1 = arith.constant 0 : i32
    return %c0_i32, %c0_i32_0 : i32, i32
  }
  func.func @transform_2(%arg0: i32) -> (i32, i32) {
    %c0_i32 = arith.constant 0 : i32
    %c0_i32_0 = arith.constant 0 : i32
    %c0_i32_1 = arith.constant 0 : i32
    return %c0_i32, %c0_i32_0 : i32, i32
  }
  func.func @transform_3(%arg0: i32) -> (i32, i32) {
    %c0_i32 = arith.constant 0 : i32
    %c0_i32_0 = arith.constant 0 : i32
    %c0_i32_1 = arith.constant 0 : i32
    return %c0_i32, %c0_i32_0 : i32, i32
  }
  func.func @transform_4(%arg0: i32) -> (i32, i32) {
    %c0_i32 = arith.constant 0 : i32
    %c0_i32_0 = arith.constant 0 : i32
    %c0_i32_1 = arith.constant 0 : i32
    return %c0_i32, %c0_i32_0 : i32, i32
  }
  func.func @transform_5(%arg0: i32) -> (i32, i32) {
    %c0_i32 = arith.constant 0 : i32
    %c0_i32_0 = arith.constant 0 : i32
    %c0_i32_1 = arith.constant 0 : i32
    return %c0_i32, %c0_i32_0 : i32, i32
  }
  func.func @transform_6(%arg0: i32) -> (i32, i32) {
    %c0_i32 = arith.constant 0 : i32
    %c0_i32_0 = arith.constant 0 : i32
    %c0_i32_1 = arith.constant 0 : i32
    return %c0_i32, %c0_i32_0 : i32, i32
  }
  func.func @transform_7(%arg0: i32) -> (i32, i32) {
    %c0_i32 = arith.constant 0 : i32
    %c0_i32_0 = arith.constant 0 : i32
    %c0_i32_1 = arith.constant 0 : i32
    return %c0_i32, %c0_i32_0 : i32, i32
  }
  func.func @transform_8(%arg0: i32) -> (i32, i32) {
    %c0_i32 = arith.constant 0 : i32
    %c0_i32_0 = arith.constant 0 : i32
    %c0_i32_1 = arith.constant 0 : i32
    return %c0_i32, %c0_i32_0 : i32, i32
  }
  func.func @transform_9(%arg0: i32) -> (i32, i32) {
    %c0_i32 = arith.constant 0 : i32
    %c0_i32_0 = arith.constant 0 : i32
    return %arg0, %c0_i32 : i32, i32
  }
}

</mosaic_0001>

<bundles_post_ra>
// kernel: tpu_custom_call.1
= control target key start
LH: loop header
LB: loop body
LE: loop exit
PB: predicated region body
PF: predicated region fallthrough
CT: control target
= control target key end

     0   :  { %14 = vsyncpa [#allocation3], 0  ;;  %s4831_s0 = inlined_call_operand.hbm [shape: f32[16,128], index: 0, kind: input, shape index: {}]   ;;  %s4832_s1 = inlined_call_operand.hbm [shape: bf16[128,128], index: 1, kind: input, shape index: {}]   ;;  %s4833_s2 = inlined_call_operand.hbm [shape: bf16[128,128], index: 2, kind: input, shape index: {}]   ;;  %s4834_s3 = inlined_call_operand.hbm [shape: bf16[128,128], index: 3, kind: input, shape index: {}]   ;;  %s4835_s4 = inlined_call_operand.hbm [shape: bf16[128,128], index: 4, kind: input, shape index: {}]   ;;  %s4836_s5 = inlined_call_operand.hbm [shape: bf16[128,2048], index: 5, kind: input, shape index: {}]   ;;  %s4837_s6 = inlined_call_operand.hbm [shape: bf16[2048,128], index: 6, kind: input, shape index: {}]   ;;  %s4838_s7 = inlined_call_operand.hbm [shape: f32[9,128], index: 7, kind: input, shape index: {}]   ;;  %s4839_s8 = inlined_call_operand.hbm [shape: f32[1,2048], index: 8, kind: input, shape index: {}]   ;;  %s4840_s9 = inlined_call_operand.hbm [shape: f32[16,128], index: 9, kind: output, shape index: {}]  }
   0x1   :  { %15 = vsyncpa [#allocation6], 0 }
   0x2   :  { %16 = vsyncpa [#allocation9], 0 }
   0x3   :  { %17 = vsyncpa [#allocation12], 0 }
   0x4   :  { %18 = vsyncpa [#allocation15], 0 }
   0x5   :  { %19 = vsyncpa [#allocation4], 0  ;;  %s4519_s30 = smov [#allocation5]  }
   0x6   :  { %s37_s10 = sshll.u32 %s4519_s30, 4  ;;  %s38_s10 = int_to_ptr.vmem [resolvable:$true] %s37_s10 }
   0x7   :  { %s4315_s11 = scalar_lea.vmem %s38_s10, 1024  ;;  %p4320_p1 = scmp.lt.s32.totalorder %s38_s10, %s38_s10 }
   0x8   :  { %p4316_p0 = scmp.ne.s32.totalorder %s38_s10, %s4315_s11  ;;  %p4321_p2 = scmp.lt.s32.totalorder %s4315_s11, %s4315_s11 }
   0xa   :  { %p4322_p3 = por %p4321_p2, %p4320_p1 }
   0xc   :  { %p4323_p4 = pnand %p4322_p3, %p4316_p0 }
   0xe   :  { %4326 = shalt.err (!%p4323_p4)
}
   0xf   :  { %s4520_s12 = smov 64   ;;  %s4521_s13 = smov 4  }
  0x10   :  { %43 = dma.hbm_to_vmem [thread:$0]  %s4832_s1, 1024, %s38_s10, [#allocation6], %s4520_s12, %s4520_s12, %s4521_s13  }
  0x11   :  { %s4522_s16 = smov [#allocation8]   ;;  %s4523_s18 = smov [#allocation11]  }
  0x12   :  { %s61_s17 = sshll.u32 %s4522_s16, 4  ;;  %s85_s19 = sshll.u32 %s4523_s18, 4  ;;  %s62_s17 = int_to_ptr.vmem [resolvable:$true] %s61_s17  ;;  %s86_s19 = int_to_ptr.vmem [resolvable:$true] %s85_s19 }
  0x13   :  { %s4335_s20 = scalar_lea.vmem %s62_s17, 1024  ;;  %p4340_p6 = scmp.lt.s32.totalorder %s62_s17, %s62_s17 }
  0x14   :  { %p4336_p5 = scmp.ne.s32.totalorder %s62_s17, %s4335_s20  ;;  %p4341_p7 = scmp.lt.s32.totalorder %s4335_s20, %s4335_s20 }
  0x16   :  { %p4342_p8 = por %p4341_p7, %p4340_p6 }
  0x18   :  { %p4343_p9 = pnand %p4342_p8, %p4336_p5 }
  0x1a   :  { %4346 = shalt.err (!%p4343_p9)
}
  0x1b   :  { %67 = dma.hbm_to_vmem [thread:$0]  %s4834_s3, 1024, %s62_s17, [#allocation9], %s4520_s12, %s4520_s12, %s4521_s13  }
  0x1c   :  { %s4355_s1 = scalar_lea.vmem %s86_s19, 16384  ;;  %p4360_p11 = scmp.lt.s32.totalorder %s86_s19, %s86_s19 }
  0x1d   :  { %p4356_p10 = scmp.ne.s32.totalorder %s86_s19, %s4355_s1  ;;  %p4361_p12 = scmp.lt.s32.totalorder %s4355_s1, %s4355_s1 }
  0x1f   :  { %p4362_p13 = por %p4361_p12, %p4360_p11 }
  0x21   :  { %p4363_p0 = pnand %p4362_p13, %p4356_p10 }
  0x23   :  { %4366 = shalt.err (!%p4363_p0)
}
  0x24   :  { %s4524_s23 = smov 1024   ;;  %s4525_s26 = smov [#allocation14]  }
  0x25   :  { %91 = dma.hbm_to_vmem [thread:$0]  %s4836_s5, 16384, %s86_s19, [#allocation12], %s4524_s23, %s4524_s23, %s4520_s12  }
  0x26   :  { %s109_s27 = sshll.u32 %s4525_s26, 4  ;;  %s4526_s28 = smov [#allocation2]   ;;  %s110_s27 = int_to_ptr.vmem [resolvable:$true] %s109_s27 }
  0x27   :  { %s25_s29 = sshll.u32 %s4526_s28, 4  ;;  %s4375_s3 = scalar_lea.vmem %s110_s27, 256  ;;  %s26_s29 = int_to_ptr.vmem [resolvable:$true] %s25_s29 }
  0x28   :  { %p4376_p1 = scmp.ne.s32.totalorder %s110_s27, %s4375_s3  ;;  %p4380_p2 = scmp.lt.s32.totalorder %s110_s27, %s110_s27 }
  0x29   :  { %p4381_p3 = scmp.lt.s32.totalorder %s4375_s3, %s4375_s3 }
  0x2b   :  { %p4382_p4 = por %p4381_p3, %p4380_p2 }
  0x2d   :  { %p4383_p5 = pnand %p4382_p4, %p4376_p1 }
  0x2f   :  { %4386 = shalt.err (!%p4383_p5)
}
  0x30   :  { %s4527_s30 = smov 128   ;;  %s4528_s10 = smov 8  }
  0x31   :  { %115 = dma.hbm_to_vmem [thread:$0]  %s4838_s7, 256, %s110_s27, [#allocation15], %s4527_s30, %s4527_s30, %s4528_s10  }
  0x32   :  { %s4395_s14 = scalar_lea.vmem %s26_s29, 256  ;;  %p4400_p7 = scmp.lt.s32.totalorder %s26_s29, %s26_s29 }
  0x33   :  { %p4396_p6 = scmp.ne.s32.totalorder %s26_s29, %s4395_s14  ;;  %p4401_p8 = scmp.lt.s32.totalorder %s4395_s14, %s4395_s14 }
  0x35   :  { %p4402_p9 = por %p4401_p8, %p4400_p7 }
  0x37   :  { %p4403_p10 = pnand %p4402_p9, %p4396_p6 }
  0x39   :  { %4406 = shalt.err (!%p4403_p10)
}
  0x3a   :  { %31 = dma.hbm_to_vmem [thread:$0]  %s4831_s0, 256, %s26_s29, [#allocation3], %s4527_s30, %s4527_s30, %s4528_s10  }
  0x3b   :  { %s4529_s17 = smov [#allocation7]   ;;  %s4530_s19 = smov [#allocation10]  }
  0x3c   :  { %s49_s18 = sshll.u32 %s4529_s17, 4  ;;  %s73_s20 = sshll.u32 %s4530_s19, 4  ;;  %s50_s18 = int_to_ptr.vmem [resolvable:$true] %s49_s18  ;;  %s74_s20 = int_to_ptr.vmem [resolvable:$true] %s73_s20 }
  0x3d   :  { %s4415_s7 = scalar_lea.vmem %s50_s18, 1024  ;;  %p4420_p12 = scmp.lt.s32.totalorder %s50_s18, %s50_s18 }
  0x3e   :  { %p4416_p11 = scmp.ne.s32.totalorder %s50_s18, %s4415_s7  ;;  %p4421_p13 = scmp.lt.s32.totalorder %s4415_s7, %s4415_s7 }
  0x40   :  { %p4422_p0 = por %p4421_p13, %p4420_p12 }
  0x42   :  { %p4423_p1 = pnand %p4422_p0, %p4416_p11 }
  0x44   :  { %4426 = shalt.err (!%p4423_p1)
}
  0x45   :  { %55 = dma.hbm_to_vmem [thread:$0]  %s4833_s2, 1024, %s50_s18, [#allocation6], %s4520_s12, %s4520_s12, %s4521_s13  }
  0x46   :  { %s4435_s0 = scalar_lea.vmem %s74_s20, 1024  ;;  %p4440_p3 = scmp.lt.s32.totalorder %s74_s20, %s74_s20 }
  0x47   :  { %p4436_p2 = scmp.ne.s32.totalorder %s74_s20, %s4435_s0  ;;  %p4441_p4 = scmp.lt.s32.totalorder %s4435_s0, %s4435_s0 }
  0x49   :  { %p4442_p5 = por %p4441_p4, %p4440_p3 }
  0x4b   :  { %p4443_p6 = pnand %p4442_p5, %p4436_p2 }
  0x4d   :  { %4446 = shalt.err (!%p4443_p6)
}
  0x4e   :  { %79 = dma.hbm_to_vmem [thread:$0]  %s4835_s4, 1024, %s74_s20, [#allocation9], %s4520_s12, %s4520_s12, %s4521_s13  }
  0x4f   :  { %s4531_s24 = smov [#allocation13]   ;;  %s4532_s26 = smov [#allocation16]  }
  0x50   :  { %s97_s25 = sshll.u32 %s4531_s24, 4  ;;  %s122_s27 = sshll.u32 %s4532_s26, 4  ;;  %s98_s25 = int_to_ptr.vmem [resolvable:$true] %s97_s25  ;;  %s123_s27 = int_to_ptr.vmem [resolvable:$true] %s122_s27 }
  0x51   :  { %s4455_s2 = scalar_lea.vmem %s98_s25, 16384  ;;  %p4460_p8 = scmp.lt.s32.totalorder %s98_s25, %s98_s25 }
  0x52   :  { %p4456_p7 = scmp.ne.s32.totalorder %s98_s25, %s4455_s2  ;;  %p4461_p9 = scmp.lt.s32.totalorder %s4455_s2, %s4455_s2 }
  0x54   :  { %p4462_p10 = por %p4461_p9, %p4460_p8 }
  0x56   :  { %p4463_p11 = pnand %p4462_p10, %p4456_p7 }
  0x58   :  { %4466 = shalt.err (!%p4463_p11)
}
  0x59   :  { %103 = dma.hbm_to_vmem [thread:$0]  %s4837_s6, 16384, %s98_s25, [#allocation12], %s4520_s12, %s4520_s12, %s4521_s13  }
  0x5a   :  { %s4475_s4 = scalar_lea.vmem %s123_s27, 256  ;;  %p4480_p13 = scmp.lt.s32.totalorder %s123_s27, %s123_s27 }
  0x5b   :  { %p4476_p12 = scmp.ne.s32.totalorder %s123_s27, %s4475_s4  ;;  %p4481_p0 = scmp.lt.s32.totalorder %s4475_s4, %s4475_s4 }
  0x5d   :  { %p4482_p1 = por %p4481_p0, %p4480_p13 }
  0x5f   :  { %p4483_p2 = pnand %p4482_p1, %p4476_p12 }
  0x61   :  { %4486 = shalt.err (!%p4483_p2)
}
  0x62   :  { %125 = dma.hbm_to_vmem [thread:$0]  %s4839_s8, 256, %s123_s27, [#allocation15]  }
  0x63   :  { %4507 = dma.done.wait [#allocation3], 256  }
  0x64   :  { %4508 = vsyncadd [#allocation3], 4294967040 }
  0x65   :  { %4509 = dma.done.wait [#allocation6], 2048  }
  0x66   :  { %4510 = vsyncadd [#allocation6], 4294965248 }
  0x67   :  { %4511 = dma.done.wait [#allocation9], 2048  }
  0x68   :  { %4512 = vsyncadd [#allocation9], 4294965248 }
  0x69   :  { %4513 = dma.done.wait [#allocation12], 32768  }
  0x6a   :  { %4514 = vsyncadd [#allocation12], 4294934528 }
  0x6b   :  { %4515 = dma.done.wait [#allocation15], 512  }
  0x6c   :  { %4516 = vsyncadd [#allocation15], 4294966784  ;;  %v4533_v0 = vmov 0.0   ;;  %vm4534_vm0 = vmmov 0   ;;  %v4130_v1 = vld [vmem:[#allocation7 + $0x38] sm:$0xff]   ;;  %v4132_v3 = vld [vmem:[#allocation7 + $0x30] sm:$0xff]   ;;  %v175_v20 = vlaneseq }
  0x6d   :  { %4028 = vmatprep.subr.bf16.mxu1 %v4533_v0  ;;  %4008 = vmatprep.subr.bf16.mxu0 %v4533_v0  ;;  %v4131_v2 = vld [vmem:[#allocation5 + $0x38] sm:$0xff]   ;;  %v4133_v4 = vld [vmem:[#allocation5 + $0x30] sm:$0xff]   ;;  %v4134_v5 = vld [vmem:[#allocation7 + $0x28] sm:$0xff]   ;;  %vm572_vm1 = vcmask 64512   ;;  %vm600_vm2 = vcmask 1043456   ;;  %s4536_s6 = smov [#allocation17]  }
  0x6e   :  { %4044 = vmatprep.mubr.msk.bf16.mxu1 %vm4534_vm0, %v4533_v0  ;;  %4024 = vmatprep.mubr.msk.bf16.mxu0 %vm4534_vm0, %v4533_v0  ;;  %v4135_v6 = vld [vmem:[#allocation5 + $0x28] sm:$0xff]   ;;  %v4136_v7 = vld [vmem:[#allocation7 + $0x20] sm:$0xff]   ;;  %v4138_v9 = vld [vmem:[#allocation7 + $0x18] sm:$0xff]   ;;  %v4672_v21 = vshrl.u32 %v175_v20, 7  ;;  %s3481_s8 = sshll.u32 %s4536_s6, 4  ;;  %s3482_s8 = int_to_ptr.vmem [resolvable:$true] %s3481_s8 }
  0x6f   :  { %4029 = vmatpush3.bf16.msra.mxu1 %v4130_v1  ;;  %4009 = vmatpush3.bf16.msra.mxu0 %v4131_v2  ;;  %v4137_v8 = vld [vmem:[#allocation5 + $0x20] sm:$0xff]   ;;  %v4139_v10 = vld [vmem:[#allocation5 + $0x18] sm:$0xff]   ;;  %v4140_v11 = vld [vmem:[#allocation7 + $0x10] sm:$0xff]   ;;  %s4487_s12 = scalar_lea.vmem %s3482_s8, 256  ;;  %p4492_p4 = scmp.lt.s32.totalorder %s3482_s8, %s3482_s8 }
  0x70   :  { %4030 = vmatprep.subr.bf16.mxu1 %v4533_v0  ;;  %4010 = vmatprep.subr.bf16.mxu0 %v4533_v0  ;;  %v4141_v12 = vld [vmem:[#allocation5 + $0x10] sm:$0xff]   ;;  %v4142_v13 = vld [vmem:[#allocation7 + $0x8] sm:$0xff]   ;;  %v4144_v15 = vld [vmem:[#allocation7] sm:$0xff]   ;;  %v4675_v22 = vsub.s32 1, %v4672_v21  ;;  %v4680_v24 = vsub.s32 0, %v4672_v21  ;;  %p4488_p3 = scmp.ne.s32.totalorder %s3482_s8, %s4487_s12  ;;  %p4493_p5 = scmp.lt.s32.totalorder %s4487_s12, %s4487_s12 }
  0x71   :  { %v4143_v14 = vld [vmem:[#allocation5 + $0x8] sm:$0xff]   ;;  %v4654_v16 = vld [vmem:[#allocation2] sm:$0xff]  ;;  %v4656_v17 = vld [vmem:[#allocation2 + $0x8] sm:$0xff] }
  0x72   :  { %v4145_v18 = vld [vmem:[#allocation5] sm:$0xff]   ;;  %v4662_v19 = vpack.c.bf16 %v4656_v17, %v4654_v16  ;;  %v4146_v43 = vld [vmem:[#allocation8 + $0x38] sm:$0xff]   ;;  %v4147_v44 = vld [vmem:[#allocation8 + $0x30] sm:$0xff]   ;;  %p4494_p6 = por %p4493_p5, %p4492_p4 }
  0x73   :  { %4031 = vmatpush3.bf16.msra.mxu1 %v4132_v3  ;;  %4011 = vmatpush3.bf16.msra.mxu0 %v4133_v4  ;;  %v4677_v23 = vld [vmem:[#allocation14] sm:$0xff]  ;;  %v4148_v45 = vld [vmem:[#allocation8 + $0x28] sm:$0xff]   ;;  %v4150_v47 = vld [vmem:[#allocation8 + $0x18] sm:$0xff]  }
  0x74   :  { %4032 = vmatprep.subr.bf16.mxu1 %v4533_v0  ;;  %4012 = vmatprep.subr.bf16.mxu0 %v4533_v0  ;;  %v287_v25 = vrot.slane %v4677_v23, %v4675_v22  ;;  %v178_v27 = vrot.slane %v4677_v23, %v4680_v24  ;;  %v4149_v46 = vld [vmem:[#allocation8 + $0x20] sm:$0xff]   ;;  %v4151_v48 = vld [vmem:[#allocation8 + $0x10] sm:$0xff]   ;;  %v4152_v49 = vld [vmem:[#allocation8 + $0x8] sm:$0xff]   ;;  %p4495_p7 = pnand %p4494_p6, %p4488_p3 }
  0x75   :  { %v4153_v50 = vld [vmem:[#allocation8] sm:$0xff]  }
  0x77   :  { %4033 = vmatpush3.bf16.msra.mxu1 %v4134_v5  ;;  %4013 = vmatpush3.bf16.msra.mxu0 %v4135_v6 }
  0x78   :  { %4034 = vmatprep.subr.bf16.mxu1 %v4533_v0  ;;  %4014 = vmatprep.subr.bf16.mxu0 %v4533_v0 }
  0x7b   :  { %4035 = vmatpush3.bf16.msra.mxu1 %v4136_v7  ;;  %4015 = vmatpush3.bf16.msra.mxu0 %v4137_v8  ;;  %v4708_v8 = vsub.s32 2, %v4672_v21 }
  0x7c   :  { %4036 = vmatprep.subr.bf16.mxu1 %v4533_v0  ;;  %4016 = vmatprep.subr.bf16.mxu0 %v4533_v0 }
  0x7f   :  { %4037 = vmatpush3.bf16.msra.mxu1 %v4138_v9  ;;  %4017 = vmatpush3.bf16.msra.mxu0 %v4139_v10  ;;  %v396_v10 = vrot.slane %v4677_v23, %v4708_v8 }
  0x80   :  { %4038 = vmatprep.subr.bf16.mxu1 %v4533_v0  ;;  %4018 = vmatprep.subr.bf16.mxu0 %v4533_v0 }
  0x83   :  { %4039 = vmatpush3.bf16.msra.mxu1 %v4140_v11  ;;  %4019 = vmatpush3.bf16.msra.mxu0 %v4141_v12 }
  0x84   :  { %4040 = vmatprep.subr.bf16.mxu1 %v4533_v0  ;;  %4020 = vmatprep.subr.bf16.mxu0 %v4533_v0 }
  0x87   :  { %4041 = vmatpush3.bf16.msra.mxu1 %v4142_v13  ;;  %4021 = vmatpush3.bf16.msra.mxu0 %v4143_v14 }
  0x88   :  { %4042 = vmatprep.subr.bf16.mxu1 %v4533_v0  ;;  %4022 = vmatprep.subr.bf16.mxu0 %v4533_v0 }
  0x8b   :  { %4043 = vmatpush3.bf16.msra.mxu1 %v4144_v15  ;;  %4023 = vmatpush3.bf16.msra.mxu0 %v4145_v18 }
  0x8c   :  { %4068 = vmatprep.subr.bf16.mxu1 %v4533_v0  ;;  %4048 = vmatprep.subr.bf16.mxu0 %v4533_v0 }
  0x8e   :  { %4045 = vmatmul.mubr.bf16.vlgmr.msra.gmra.mxu1 %v4662_v19  ;;  %4025 = vmatmul.mubr.bf16.vlgmr.msra.gmra.mxu0 %v4662_v19 }
  0x8f   :  { %4070 = vmatprep.mubr.msk.bf16.mxu1 %vm4534_vm0, %v4533_v0  ;;  %4064 = vmatprep.mubr.msk.bf16.mxu0 %vm4534_vm0, %v4533_v0 }
  0x90   :  { %4049 = vmatpush3.bf16.msra.mxu0 %v4146_v43 }
  0x91   :  { %4050 = vmatprep.subr.bf16.mxu0 %v4533_v0 }
  0x94   :  { %4051 = vmatpush3.bf16.msra.mxu0 %v4147_v44 }
  0x95   :  { %4052 = vmatprep.subr.bf16.mxu0 %v4533_v0 }
  0x98   :  { %4053 = vmatpush3.bf16.msra.mxu0 %v4148_v45 }
  0x99   :  { %4054 = vmatprep.subr.bf16.mxu0 %v4533_v0 }
  0x9c   :  { %4055 = vmatpush3.bf16.msra.mxu0 %v4149_v46 }
  0x9d   :  { %4056 = vmatprep.subr.bf16.mxu0 %v4533_v0 }
  0xa0   :  { %4057 = vmatpush3.bf16.msra.mxu0 %v4150_v47 }
  0xa1   :  { %4058 = vmatprep.subr.bf16.mxu0 %v4533_v0 }
  0xa4   :  { %4059 = vmatpush3.bf16.msra.mxu0 %v4151_v48 }
  0xa5   :  { %4060 = vmatprep.subr.bf16.mxu0 %v4533_v0 }
  0xa8   :  { %4061 = vmatpush3.bf16.msra.mxu0 %v4152_v49 }
  0xa9   :  { %4062 = vmatprep.subr.bf16.mxu0 %v4533_v0 }
  0xac   :  { %4063 = vmatpush3.bf16.msra.mxu0 %v4153_v50 }
  0xad   :  { %4092 = vmatprep.subr.bf16.mxu0 %v4533_v0 }
  0xaf   :  { %4065 = vmatmul.mubr.bf16.vlgmr.msra.gmra.mxu0 %v4662_v19 }
  0xb0   :  { %4108 = vmatprep.mubr.msk.bf16.mxu0 %vm4534_vm0, %v4533_v0 }
 0x14e   :  { %v370_v26 = vpop.f32.mrf.mxu1  ;;  %v261_v29 = vpop.f32.mrf.mxu0 }
 0x14f   :  { %v371_v28 = vadd.f32 %v370_v26, %v287_v25  ;;  %v262_v33 = vadd.f32 %v261_v29, %v178_v27  ;;  %v4154_v26 = vld [vmem:[#allocation10 + $0x38] sm:$0xff]   ;;  %v4157_v29 = vld [vmem:[#allocation10 + $0x20] sm:$0xff]  }
 0x150   :  { %v4046_v30 = vpop.f32.mrf.mxu1  ;;  %v4026_v32 = vpop.f32.mrf.mxu0  ;;  %4093 = vmatpush3.bf16.msra.mxu0 %v4154_v26  ;;  %v917_v26 = vld [vmem:[#allocation11 + $0x280] sm:$0xff] }
 0x151   :  { %v488_v31 = vpack.c.bf16 %v371_v28, %v371_v28  ;;  %v486_v39 = vpack.c.bf16 %v262_v33, %v262_v33  ;;  %4094 = vmatprep.subr.bf16.mxu0 %v4533_v0  ;;  %v4156_v28 = vld [vmem:[#allocation10 + $0x28] sm:$0xff]   ;;  %v4158_v30 = vld [vmem:[#allocation10 + $0x18] sm:$0xff]  }
 0x152   :  { %v373_v34 = vpop.f32.mrf.mxu1  ;;  %v264_v35 = vpop.f32.mrf.mxu0 }
 0x153   :  { %4069 = vmatpush3.bf16.xpose.msra.mxu1 %v488_v31  ;;  %v374_v37 = vadd.f32 %v373_v34, %v287_v25  ;;  %v265_v41 = vadd.f32 %v264_v35, %v178_v27  ;;  %v4155_v27 = vld [vmem:[#allocation10 + $0x30] sm:$0xff]  }
 0x154   :  { %v4047_v36 = vpop.f32.mrf.mxu1  ;;  %4074 = vmatprep.subr.bf16.mxu1 %v4533_v0  ;;  %v4027_v38 = vpop.f32.mrf.mxu0  ;;  %4095 = vmatpush3.bf16.msra.mxu0 %v4155_v27  ;;  %v925_v27 = vld [vmem:[#allocation11 + $0x2c0] sm:$0xff] }
 0x155   :  { %v489_v40 = vpack.c.bf16 %v374_v37, %v374_v37  ;;  %v487_v42 = vpack.c.bf16 %v265_v41, %v265_v41  ;;  %4096 = vmatprep.subr.bf16.mxu0 %v4533_v0  ;;  %v4161_v41 = vld [vmem:[#allocation10] sm:$0xff]  }
 0x158   :  { %4097 = vmatpush3.bf16.msra.mxu0 %v4156_v28  ;;  %v918_v28 = vld [vmem:[#allocation11 + $0x288] sm:$0xff] }
 0x159   :  { %4098 = vmatprep.subr.bf16.mxu0 %v4533_v0 }
 0x15a   :  { %4071 = vmatmul.mubr.bf16.vlgmr.msra.gmra.mxu1 %v486_v39  ;;  %v4159_v39 = vld [vmem:[#allocation10 + $0x10] sm:$0xff]  }
 0x15b   :  { %4075 = vmatpush3.bf16.xpose.msra.mxu1 %v489_v40  ;;  %4076 = vmatprep.mubr.msk.bf16.mxu1 %vm4534_vm0, %v4533_v0  ;;  %v4160_v40 = vld [vmem:[#allocation10 + $0x8] sm:$0xff]  }
 0x15c   :  { %4080 = vmatprep.subr.bf16.mxu1 %v4533_v0  ;;  %4099 = vmatpush3.bf16.msra.mxu0 %v4157_v29  ;;  %v3612_v29 = vcombine.high %v917_v26, %v925_v27 }
 0x15d   :  { %4100 = vmatprep.subr.bf16.mxu0 %v4533_v0 }
 0x160   :  { %4101 = vmatpush3.bf16.msra.mxu0 %v4158_v30  ;;  %v926_v30 = vld [vmem:[#allocation11 + $0x2c8] sm:$0xff] }
 0x161   :  { %4102 = vmatprep.subr.bf16.mxu0 %v4533_v0 }
 0x162   :  { %4077 = vmatmul.mubr.bf16.vlgmr.msra.gmra.mxu1 %v487_v42 }
 0x163   :  { %4082 = vmatprep.mubr.msk.bf16.mxu1 %vm4534_vm0, %v4533_v0 }
 0x164   :  { %4103 = vmatpush3.bf16.msra.mxu0 %v4159_v39 }
 0x165   :  { %4104 = vmatprep.subr.bf16.mxu0 %v4533_v0 }
 0x168   :  { %4105 = vmatpush3.bf16.msra.mxu0 %v4160_v40 }
 0x169   :  { %4106 = vmatprep.subr.bf16.mxu0 %v4533_v0 }
 0x16c   :  { %4107 = vmatpush3.bf16.msra.mxu0 %v4161_v41 }
 0x16f   :  { %v479_v9 = vpop.f32.mrf.mxu0 }
 0x170   :  { %v480_v12 = vadd.f32 %v479_v9, %v396_v10 }
 0x171   :  { %v4066_v11 = vpop.f32.mrf.mxu0 }
 0x172   :  { %v490_v15 = vpack.c.bf16 %v480_v12, %v480_v12  ;;  %v933_v12 = vld [vmem:[#allocation11 + $0x300] sm:$0xff] }
 0x173   :  { %v482_v13 = vpop.f32.mrf.mxu0 }
 0x174   :  { %v483_v14 = vadd.f32 %v482_v13, %v396_v10  ;;  %v602_v20 = vsel %vm600_vm2, %v490_v15, 0  ;;  %v941_v13 = vld [vmem:[#allocation11 + $0x340] sm:$0xff] }
 0x175   :  { %v4067_v18 = vpop.f32.mrf.mxu0  ;;  %4081 = vmatpush3.bf16.msra.mxu1 %v602_v20  ;;  %v3628_v15 = vcombine.high %v933_v12, %v941_v13 }
 0x176   :  { %v491_v19 = vpack.c.bf16 %v483_v14, %v483_v14  ;;  %4086 = vmatprep.subr.bf16.mxu1 %v4533_v0  ;;  %v934_v14 = vld [vmem:[#allocation11 + $0x308] sm:$0xff] }
 0x177   :  { %v942_v18 = vld [vmem:[#allocation11 + $0x348] sm:$0xff] }
 0x178   :  { %v648_v25 = vsel %vm600_vm2, %v491_v19, 0  ;;  %v3627_v19 = vcombine.low %v933_v12, %v941_v13  ;;  %v3629_v20 = vcombine.low %v934_v14, %v942_v18  ;;  %v951_v12 = vld [vmem:[#allocation11 + $0x390] sm:$0xff] }
 0x179   :  { %v959_v13 = vld [vmem:[#allocation11 + $0x3d0] sm:$0xff] }
 0x21a   :  { %v526_v51 = vpop.f32.mrf.mxu1 }
 0x21b   :  { %v573_v52 = vsel %vm572_vm1, %v526_v51, -inf }
 0x21c   :  { %574 = vmax.xlane.f32.xlu0 %v573_v52  ;;  %v4072_v53 = vpop.f32.mrf.mxu1 }
 0x21e   :  { %v529_v54 = vpop.f32.mrf.mxu1 }
 0x220   :  { %v4073_v55 = vpop.f32.mrf.mxu1 }
 0x222   :  { %v566_v56 = vpop.f32.mrf.mxu1 }
 0x223   :  { %v576_v57 = vsel %vm572_vm1, %v566_v56, -inf }
 0x224   :  { %577 = vmax.xlane.f32.xlu0 %v576_v57  ;;  %v4078_v58 = vpop.f32.mrf.mxu1 }
 0x226   :  { %v569_v59 = vpop.f32.mrf.mxu1 }
 0x228   :  { %v4079_v60 = vpop.f32.mrf.mxu1 }
 0x229   :  { %v949_v60 = vld [vmem:[#allocation11 + $0x380] sm:$0xff] }
 0x2a5   :  { %v575_v61 = vpop.xlane.xlu0 %574 }
 0x2a6   :  { %v579_v62 = vsub.f32 %v526_v51, %v575_v61  ;;  %v4725_v51 = vsub.s32 3, %v4672_v21  ;;  %v957_v61 = vld [vmem:[#allocation11 + $0x3c0] sm:$0xff] }
 0x2a8   :  { %v581_v63 = vmul.f32 1.442695, %v579_v62  ;;  %v710_v52 = vrot.slane %v4677_v23, %v4725_v51  ;;  %v950_v62 = vld [vmem:[#allocation11 + $0x388] sm:$0xff] }
 0x2aa   :  { %4290 = vpow2.f32 %v581_v63  ;;  %v3643_v63 = vcombine.low %v949_v60, %v957_v61 }
 0x2ad   :  { %v578_v1 = vpop.xlane.xlu0 %577 }
 0x2ae   :  { %v580_v2 = vsub.f32 %v566_v56, %v578_v1  ;;  %v3644_v1 = vcombine.high %v949_v60, %v957_v61  ;;  %v854_v60 = vld [vmem:[#allocation11 + $0x88] sm:$0xff] }
 0x2b0   :  { %v583_v3 = vmul.f32 1.442695, %v580_v2  ;;  %v958_v2 = vld [vmem:[#allocation11 + $0x3c8] sm:$0xff] }
 0x2b2   :  { %4292 = vpow2.f32 %v583_v3  ;;  %v3645_v3 = vcombine.low %v950_v62, %v958_v2 }
 0x2b7   :  { %v4291_v4 = vpop.eup %4290 }
 0x2b8   :  { %v585_v5 = vsel %vm572_vm1, %v4291_v4, 0.0 }
 0x2b9   :  { %586 = vadd.xlane.f32.xlu1 %v585_v5 }
 0x2bf   :  { %v4293_v6 = vpop.eup %4292 }
 0x2c0   :  { %v588_v7 = vsel %vm572_vm1, %v4293_v6, 0.0 }
 0x2c1   :  { %589 = vadd.xlane.f32.xlu1 %v588_v7 }
 0x342   :  { %v587_v31 = vpop.xlane.xlu1 %586 }
 0x343   :  { %4294 = vrcp.f32 %v587_v31  ;;  %v3611_v31 = vcombine.low %v917_v26, %v925_v27 }
 0x34a   :  { %v590_v32 = vpop.xlane.xlu1 %589 }
 0x34b   :  { %4296 = vrcp.f32 %v590_v32  ;;  %v3613_v32 = vcombine.low %v918_v28, %v926_v30 }
 0x350   :  { %v4295_v33 = vpop.eup %4294 }
 0x351   :  { %v593_v34 = vmul.f32 %v4295_v33, %v4291_v4  ;;  %v3646_v4 = vcombine.high %v950_v62, %v958_v2  ;;  %v3614_v33 = vcombine.high %v918_v28, %v926_v30  ;;  %v862_v62 = vld [vmem:[#allocation11 + $0xc8] sm:$0xff] }
 0x352   :  { %v3550_v2 = vcombine.high %v854_v60, %v862_v62 }
 0x353   :  { %v595_v35 = vpack.c.bf16 %v593_v34, %v593_v34  ;;  %1989 = vmatprep.subr.bf16.mxu0 %v3646_v4  ;;  %v901_v34 = vld [vmem:[#allocation11 + $0x200] sm:$0xff] }
 0x354   :  { %v845_v4 = vld [vmem:[#allocation11 + $0x40] sm:$0xff] }
 0x355   :  { %4083 = vmatmul.mubr.msk.bf16.vlgmr.msra.gmra.mxu1 %vm572_vm1, %v595_v35  ;;  %v909_v35 = vld [vmem:[#allocation11 + $0x240] sm:$0xff] }
 0x356   :  { %4087 = vmatpush3.bf16.msra.mxu1 %v648_v25  ;;  %4088 = vmatprep.mubr.msk.bf16.mxu1 %vm4534_vm0, %v4533_v0  ;;  %v3630_v25 = vcombine.high %v934_v14, %v942_v18  ;;  %v3595_v39 = vcombine.low %v901_v34, %v909_v35  ;;  %v952_v14 = vld [vmem:[#allocation11 + $0x398] sm:$0xff]  ;;  %v3648_v18 = vcombine.high %v951_v12, %v959_v13 }
 0x357   :  { %1946 = vmatprep.subr.bf16.mxu1 %v3644_v1  ;;  %v3549_v1 = vcombine.low %v854_v60, %v862_v62  ;;  %v912_v60 = vld [vmem:[#allocation11 + $0x258] sm:$0xff] }
 0x358   :  { %v4297_v36 = vpop.eup %4296 }
 0x359   :  { %v594_v37 = vmul.f32 %v4297_v36, %v4293_v6  ;;  %v902_v36 = vld [vmem:[#allocation11 + $0x208] sm:$0xff] }
 0x35b   :  { %v596_v38 = vpack.c.bf16 %v594_v37, %v594_v37  ;;  %v3596_v37 = vcombine.high %v901_v34, %v909_v35 }
 0x35d   :  { %4089 = vmatmul.mubr.msk.bf16.vlgmr.msra.gmra.mxu1 %vm572_vm1, %v596_v38  ;;  %v910_v38 = vld [vmem:[#allocation11 + $0x248] sm:$0xff] }
 0x35e   :  { %1947 = vmatpush1.bf16.msra.mxu1 %v3643_v63  ;;  %v3597_v40 = vcombine.low %v902_v36, %v910_v38  ;;  %v3598_v41 = vcombine.high %v902_v36, %v910_v38  ;;  %v4747_v36 = vsub.s32 5, %v4672_v21 }
 0x35f   :  { %1948 = vmatprep.subr.bf16.mxu1 %v3628_v15  ;;  %v3647_v15 = vcombine.low %v951_v12, %v959_v13  ;;  %v879_v12 = vld [vmem:[#allocation11 + $0x150] sm:$0xff]  ;;  %v872_v13 = vld [vmem:[#allocation11 + $0x118] sm:$0xff] }
 0x362   :  { %1949 = vmatpush1.bf16.msra.mxu1 %v3627_v19  ;;  %v960_v19 = vld [vmem:[#allocation11 + $0x3d8] sm:$0xff] }
 0x363   :  { %1950 = vmatprep.subr.bf16.mxu1 %v3612_v29  ;;  %v3650_v26 = vcombine.high %v952_v14, %v960_v19 }
 0x366   :  { %1951 = vmatpush1.bf16.msra.mxu1 %v3611_v31 }
 0x367   :  { %1952 = vmatprep.subr.bf16.mxu1 %v3596_v37 }
 0x36a   :  { %1953 = vmatpush1.bf16.msra.mxu1 %v3595_v39  ;;  %v834_v39 = vrot.slane %v4677_v23, %v4747_v36 }
 0x415   :  { %v638_v42 = vpop.f32.mrf.mxu1 }
 0x417   :  { %v4084_v43 = vpop.f32.mrf.mxu1 }
 0x418   :  { %v893_v43 = vld [vmem:[#allocation11 + $0x1c0] sm:$0xff] }
 0x419   :  { %v641_v44 = vpop.f32.mrf.mxu1 }
 0x41a   :  { %v886_v44 = vld [vmem:[#allocation11 + $0x188] sm:$0xff] }
 0x41b   :  { %v4085_v45 = vpop.f32.mrf.mxu1 }
 0x41d   :  { %v684_v46 = vpop.f32.mrf.mxu1 }
 0x41e   :  { %v690_v47 = vpack.c.bf16 %v684_v46, %v638_v42  ;;  %v885_v42 = vld [vmem:[#allocation11 + $0x180] sm:$0xff]  ;;  %v894_v46 = vld [vmem:[#allocation11 + $0x1c8] sm:$0xff] }
 0x41f   :  { %v4090_v48 = vpop.f32.mrf.mxu1  ;;  %v3580_v45 = vcombine.high %v885_v42, %v893_v43 }
 0x420   :  { %4109 = vmatmul.mubr.bf16.vlgmr.msra.gmra.mxu0 %v690_v47  ;;  %v3579_v47 = vcombine.low %v885_v42, %v893_v43  ;;  %v3581_v48 = vcombine.low %v886_v44, %v894_v46  ;;  %v935_v43 = vld [vmem:[#allocation11 + $0x310] sm:$0xff] }
 0x421   :  { %v687_v49 = vpop.f32.mrf.mxu1  ;;  %1990 = vmatpush1.bf16.msra.mxu0 %v3645_v3  ;;  %1954 = vmatprep.subr.bf16.mxu1 %v3580_v45  ;;  %v837_v3 = vld [vmem:[#allocation11] sm:$0xff]  ;;  %v936_v45 = vld [vmem:[#allocation11 + $0x318] sm:$0xff] }
 0x422   :  { %1991 = vmatprep.subr.bf16.mxu0 %v3630_v25  ;;  %v3582_v49 = vcombine.high %v886_v44, %v894_v46  ;;  %1955 = vmatpush1.bf16.msra.mxu1 %v3579_v47  ;;  %v3649_v25 = vcombine.low %v952_v14, %v960_v19  ;;  %v943_v44 = vld [vmem:[#allocation11 + $0x350] sm:$0xff]  ;;  %v944_v46 = vld [vmem:[#allocation11 + $0x358] sm:$0xff] }
 0x423   :  { %v4091_v50 = vpop.f32.mrf.mxu1  ;;  %v880_v14 = vld [vmem:[#allocation11 + $0x158] sm:$0xff] }
 0x424   :  { %v869_v50 = vld [vmem:[#allocation11 + $0x100] sm:$0xff] }
 0x425   :  { %1992 = vmatpush1.bf16.msra.mxu0 %v3629_v20  ;;  %v4535_v20 = vmov 0  }
 0x426   :  { %1993 = vmatprep.subr.bf16.mxu0 %v3614_v33  ;;  %1978 = vmatprep.mubr.bf16.mxu1 %v4535_v20  ;;  %v4742_v33 = vsub.s32 4, %v4672_v21 }
 0x427   :  { %2021 = vmatprep.mubr.bf16.mxu0 %v4535_v20 }
 0x428   :  { %v828_v35 = vrot.slane %v4677_v23, %v4742_v33  ;;  %v927_v23 = vld [vmem:[#allocation11 + $0x2d0] sm:$0xff] }
 0x429   :  { %1994 = vmatpush1.bf16.msra.mxu0 %v3613_v32 }
 0x42a   :  { %1995 = vmatprep.subr.bf16.mxu0 %v3598_v41 }
 0x42d   :  { %1996 = vmatpush1.bf16.msra.mxu0 %v3597_v40 }
 0x42e   :  { %1997 = vmatprep.subr.bf16.mxu0 %v3582_v49 }
 0x431   :  { %1998 = vmatpush1.bf16.msra.mxu0 %v3581_v48 }
 0x4e0   :  { %v793_v53 = vpop.f32.mrf.mxu0 }
 0x4e1   :  { %v794_v0 = vadd.f32 %v793_v53, %v710_v52  ;;  %v870_v53 = vld [vmem:[#allocation11 + $0x108] sm:$0xff] }
 0x4e2   :  { %v4110_v54 = vpop.f32.mrf.mxu0 }
 0x4e3   :  { %v800_v55 = vadd.f32 %v794_v0, %v4654_v16  ;;  %v878_v54 = vld [vmem:[#allocation11 + $0x148] sm:$0xff] }
 0x4e4   :  { %v796_v56 = vpop.f32.mrf.mxu0 }
 0x4e5   :  { %v797_v57 = vadd.f32 %v796_v56, %v710_v52  ;;  %802 = vadd.xlane.f32.xlu0 %v800_v55  ;;  %v877_v52 = vld [vmem:[#allocation11 + $0x140] sm:$0xff]  ;;  %v3565_v56 = vcombine.low %v870_v53, %v878_v54 }
 0x4e6   :  { %v4111_v58 = vpop.f32.mrf.mxu0  ;;  %v3564_v0 = vcombine.high %v869_v50, %v877_v52 }
 0x4e7   :  { %v801_v59 = vadd.f32 %v797_v57, %v4656_v17  ;;  %v3566_v57 = vcombine.high %v870_v53, %v878_v54  ;;  %v853_v58 = vld [vmem:[#allocation11 + $0x80] sm:$0xff]  ;;  %v920_v53 = vld [vmem:[#allocation11 + $0x298] sm:$0xff]  ;;  %v3633_v54 = vcombine.low %v936_v45, %v944_v46 }
 0x4e8   :  { %1956 = vmatprep.subr.bf16.mxu1 %v3564_v0  ;;  %v928_v0 = vld [vmem:[#allocation11 + $0x2d8] sm:$0xff] }
 0x4e9   :  { %804 = vadd.xlane.f32.xlu1 %v801_v59  ;;  %1999 = vmatprep.subr.bf16.mxu0 %v3566_v57  ;;  %v903_v57 = vld [vmem:[#allocation11 + $0x210] sm:$0xff]  ;;  %v3617_v62 = vcombine.low %v920_v53, %v928_v0 }
 0x4ea   :  { %2000 = vmatpush1.bf16.msra.mxu0 %v3565_v56  ;;  %v3618_v56 = vcombine.high %v920_v53, %v928_v0  ;;  %v937_v0 = vld [vmem:[#allocation11 + $0x320] sm:$0xff] }
 0x4eb   :  { %2001 = vmatprep.subr.bf16.mxu0 %v3550_v2  ;;  %v887_v2 = vld [vmem:[#allocation11 + $0x190] sm:$0xff] }
 0x4ee   :  { %2002 = vmatpush1.bf16.msra.mxu0 %v3549_v1 }
 0x56e   :  { %v803_v16 = vpop.xlane.xlu0 %802 }
 0x56f   :  { %v807_v5 = vmul.f32 0.0078125, %v803_v16  ;;  %v838_v16 = vld [vmem:[#allocation11 + $0x8] sm:$0xff] }
 0x571   :  { %v4731_v6 = vsub.f32 %v800_v55, %v807_v5  ;;  %v3563_v55 = vcombine.low %v869_v50, %v877_v52  ;;  %v3532_v5 = vcombine.high %v837_v3, %v845_v4  ;;  %v3634_v50 = vcombine.high %v936_v45, %v944_v46  ;;  %v919_v52 = vld [vmem:[#allocation11 + $0x290] sm:$0xff]  ;;  %v961_v45 = vld [vmem:[#allocation11 + $0x3e0] sm:$0xff]  ;;  %v954_v46 = vld [vmem:[#allocation11 + $0x3a8] sm:$0xff] }
 0x572   :  { %v805_v7 = vpop.xlane.xlu1 %804 }
 0x573   :  { %v808_v9 = vmul.f32 0.0078125, %v805_v7  ;;  %v811_v17 = vmul.f32 %v4731_v6, %v4731_v6  ;;  %1957 = vmatpush1.bf16.msra.mxu1 %v3563_v55  ;;  %v846_v7 = vld [vmem:[#allocation11 + $0x48] sm:$0xff]  ;;  %v3616_v55 = vcombine.high %v919_v52, %v927_v23 }
 0x575   :  { %v4735_v10 = vsub.f32 %v801_v59, %v808_v9  ;;  %813 = vadd.xlane.f32.xlu0 %v811_v17  ;;  %v861_v59 = vld [vmem:[#allocation11 + $0xc0] sm:$0xff]  ;;  %v3531_v9 = vcombine.low %v837_v3, %v845_v4  ;;  %v3533_v17 = vcombine.low %v838_v16, %v846_v7  ;;  %v895_v3 = vld [vmem:[#allocation11 + $0x1d0] sm:$0xff]  ;;  %v888_v4 = vld [vmem:[#allocation11 + $0x198] sm:$0xff] }
 0x576   :  { %v3548_v61 = vcombine.high %v853_v58, %v861_v59  ;;  %v3547_v63 = vcombine.low %v853_v58, %v861_v59  ;;  %v911_v58 = vld [vmem:[#allocation11 + $0x250] sm:$0xff]  ;;  %v904_v59 = vld [vmem:[#allocation11 + $0x218] sm:$0xff] }
 0x577   :  { %v812_v11 = vmul.f32 %v4735_v10, %v4735_v10  ;;  %v3602_v1 = vcombine.high %v904_v59, %v912_v60 }
 0x578   :  { %1958 = vmatprep.subr.bf16.mxu1 %v3548_v61  ;;  %v3615_v61 = vcombine.low %v919_v52, %v927_v23 }
 0x579   :  { %815 = vadd.xlane.f32.xlu1 %v812_v11  ;;  %1959 = vmatpush1.bf16.msra.mxu1 %v3547_v63  ;;  %v3534_v11 = vcombine.high %v838_v16, %v846_v7  ;;  %v3600_v63 = vcombine.high %v903_v57, %v911_v58  ;;  %v896_v16 = vld [vmem:[#allocation11 + $0x1d8] sm:$0xff]  ;;  %v3601_v7 = vcombine.low %v904_v59, %v912_v60  ;;  %v921_v60 = vld [vmem:[#allocation11 + $0x2a0] sm:$0xff] }
 0x57a   :  { %1960 = vmatprep.subr.bf16.mxu1 %v3532_v5  ;;  %v3599_v5 = vcombine.low %v903_v57, %v911_v58 }
 0x57b   :  { %2003 = vmatprep.subr.bf16.mxu0 %v3534_v11  ;;  %v871_v11 = vld [vmem:[#allocation11 + $0x110] sm:$0xff] }
 0x57c   :  { %2004 = vmatpush1.bf16.msra.mxu0 %v3533_v17  ;;  %v3586_v17 = vcombine.high %v888_v4, %v896_v16  ;;  %v3568_v19 = vcombine.high %v871_v11, %v879_v12 }
 0x57d   :  { %1961 = vmatpush1.bf16.msra.mxu1 %v3531_v9  ;;  %2075 = vmatprep.subr.bf16.mxu0 %v3650_v26  ;;  %v3584_v9 = vcombine.high %v887_v2, %v895_v3  ;;  %v855_v26 = vld [vmem:[#allocation11 + $0x90] sm:$0xff] }
 0x57e   :  { %2032 = vmatprep.subr.bf16.mxu1 %v3648_v18  ;;  %v3585_v18 = vcombine.low %v888_v4, %v896_v16  ;;  %v905_v16 = vld [vmem:[#allocation11 + $0x220] sm:$0xff] }
 0x5fe   :  { %v814_v27 = vpop.xlane.xlu0 %813 }
 0x5ff   :  { %v817_v28 = vmul.f32 0.0078125, %v814_v27  ;;  %v863_v27 = vld [vmem:[#allocation11 + $0xd0] sm:$0xff] }
 0x601   :  { %v819_v29 = vadd.f32 1e-05, %v817_v28  ;;  %v856_v28 = vld [vmem:[#allocation11 + $0x98] sm:$0xff] }
 0x602   :  { %v816_v30 = vpop.xlane.xlu1 %815 }
 0x603   :  { %4298 = vrsqrt.f32 %v819_v29  ;;  %v818_v31 = vmul.f32 0.0078125, %v816_v30  ;;  %v864_v29 = vld [vmem:[#allocation11 + $0xd8] sm:$0xff]  ;;  %v3567_v30 = vcombine.low %v871_v11, %v879_v12 }
 0x605   :  { %v820_v32 = vadd.f32 1e-05, %v818_v31  ;;  %v3569_v31 = vcombine.low %v872_v13, %v880_v14 }
 0x607   :  { %4300 = vrsqrt.f32 %v820_v32  ;;  %v3552_v32 = vcombine.high %v855_v26, %v863_v27 }
 0x610   :  { %v4299_v34 = vpop.eup %4298 }
 0x611   :  { %v823_v37 = vmul.f32 %v4299_v34, %v4731_v6  ;;  %v3632_v6 = vcombine.high %v935_v43, %v943_v44  ;;  %v3554_v34 = vcombine.high %v856_v28, %v864_v29 }
 0x613   :  { %v829_v40 = vmul.f32 %v828_v35, %v823_v37  ;;  %v847_v37 = vld [vmem:[#allocation11 + $0x50] sm:$0xff] }
 0x614   :  { %v4301_v38 = vpop.eup %4300 }
 0x615   :  { %v824_v41 = vmul.f32 %v4301_v38, %v4735_v10  ;;  %v4753_v47 = vadd.f32 %v834_v39, %v829_v40  ;;  %v3631_v10 = vcombine.low %v935_v43, %v943_v44  ;;  %v840_v38 = vld [vmem:[#allocation11 + $0x18] sm:$0xff]  ;;  %v3551_v40 = vcombine.low %v855_v26, %v863_v27  ;;  %v953_v44 = vld [vmem:[#allocation11 + $0x3a0] sm:$0xff] }
 0x616   :  { %v3652_v23 = vcombine.high %v953_v44, %v961_v45 }
 0x617   :  { %v830_v42 = vmul.f32 %v828_v35, %v824_v41  ;;  %v839_v35 = vld [vmem:[#allocation11 + $0x10] sm:$0xff]  ;;  %v3553_v41 = vcombine.low %v856_v28, %v864_v29  ;;  %v873_v29 = vld [vmem:[#allocation11 + $0x120] sm:$0xff] }
 0x619   :  { %v4755_v48 = vadd.f32 %v834_v39, %v830_v42  ;;  %v848_v39 = vld [vmem:[#allocation11 + $0x58] sm:$0xff]  ;;  %v3536_v42 = vcombine.high %v839_v35, %v847_v37 }
 0x61a   :  { %v3538_v43 = vcombine.high %v840_v38, %v848_v39  ;;  %v3537_v52 = vcombine.low %v840_v38, %v848_v39  ;;  %v857_v39 = vld [vmem:[#allocation11 + $0xa0] sm:$0xff] }
 0x61b   :  { %v4759_v49 = vpack.c.bf16 %v4755_v48, %v4753_v47 }
 0x61d   :  { %1979 = vmatmul.mubr.bf16.vlgmr.msra.gmra.mxu1 %v4759_v49  ;;  %2022 = vmatmul.mubr.bf16.vlgmr.msra.gmra.mxu0 %v4759_v49 }
 0x61e   :  { %2033 = vmatpush1.bf16.msra.mxu1 %v3647_v15  ;;  %2076 = vmatpush1.bf16.msra.mxu0 %v3649_v25  ;;  %v3583_v15 = vcombine.low %v887_v2, %v895_v3  ;;  %v3570_v25 = vcombine.high %v872_v13, %v880_v14  ;;  %v889_v14 = vld [vmem:[#allocation11 + $0x1a0] sm:$0xff] }
 0x61f   :  { %2034 = vmatprep.subr.bf16.mxu1 %v3632_v6  ;;  %2077 = vmatprep.subr.bf16.mxu0 %v3634_v50  ;;  %v962_v6 = vld [vmem:[#allocation11 + $0x3e8] sm:$0xff]  ;;  %v3535_v50 = vcombine.low %v839_v35, %v847_v37 }
 0x620   :  { %2064 = vmatprep.mubr.bf16.mxu1 %v4535_v20  ;;  %2107 = vmatprep.mubr.bf16.mxu0 %v4535_v20  ;;  %v3654_v53 = vcombine.high %v954_v46, %v962_v6  ;;  %v3653_v57 = vcombine.low %v954_v46, %v962_v6  ;;  %v841_v6 = vld [vmem:[#allocation11 + $0x20] sm:$0xff] }
 0x622   :  { %2035 = vmatpush1.bf16.msra.mxu1 %v3631_v10  ;;  %2078 = vmatpush1.bf16.msra.mxu0 %v3633_v54  ;;  %v945_v10 = vld [vmem:[#allocation11 + $0x360] sm:$0xff]  ;;  %v938_v54 = vld [vmem:[#allocation11 + $0x328] sm:$0xff] }
 0x623   :  { %2036 = vmatprep.subr.bf16.mxu1 %v3616_v55  ;;  %2079 = vmatprep.subr.bf16.mxu0 %v3618_v56  ;;  %v946_v55 = vld [vmem:[#allocation11 + $0x368] sm:$0xff]  ;;  %v3651_v56 = vcombine.low %v953_v44, %v961_v45  ;;  %v3636_v58 = vcombine.high %v937_v0, %v945_v10 }
 0x624   :  { %v3638_v59 = vcombine.high %v938_v54, %v946_v55  ;;  %v3637_v2 = vcombine.low %v938_v54, %v946_v55  ;;  %v955_v55 = vld [vmem:[#allocation11 + $0x3b0] sm:$0xff] }
 0x626   :  { %2037 = vmatpush1.bf16.msra.mxu1 %v3615_v61  ;;  %2080 = vmatpush1.bf16.msra.mxu0 %v3617_v62  ;;  %v929_v61 = vld [vmem:[#allocation11 + $0x2e0] sm:$0xff]  ;;  %v922_v62 = vld [vmem:[#allocation11 + $0x2a8] sm:$0xff] }
 0x627   :  { %2038 = vmatprep.subr.bf16.mxu1 %v3600_v63  ;;  %2081 = vmatprep.subr.bf16.mxu0 %v3602_v1  ;;  %v930_v63 = vld [vmem:[#allocation11 + $0x2e8] sm:$0xff]  ;;  %v3635_v1 = vcombine.low %v937_v0, %v945_v10  ;;  %v3620_v3 = vcombine.high %v921_v60, %v929_v61 }
 0x628   :  { %v3622_v4 = vcombine.high %v922_v62, %v930_v63  ;;  %v3621_v11 = vcombine.low %v922_v62, %v930_v63  ;;  %v939_v63 = vld [vmem:[#allocation11 + $0x330] sm:$0xff] }
 0x62a   :  { %2039 = vmatpush1.bf16.msra.mxu1 %v3599_v5  ;;  %2082 = vmatpush1.bf16.msra.mxu0 %v3601_v7  ;;  %v913_v5 = vld [vmem:[#allocation11 + $0x260] sm:$0xff]  ;;  %v906_v7 = vld [vmem:[#allocation11 + $0x228] sm:$0xff] }
 0x62b   :  { %2040 = vmatprep.subr.bf16.mxu1 %v3584_v9  ;;  %2083 = vmatprep.subr.bf16.mxu0 %v3586_v17  ;;  %v914_v9 = vld [vmem:[#allocation11 + $0x268] sm:$0xff]  ;;  %v3619_v17 = vcombine.low %v921_v60, %v929_v61  ;;  %v3604_v12 = vcombine.high %v905_v16, %v913_v5 }
 0x62c   :  { %v3606_v13 = vcombine.high %v906_v7, %v914_v9  ;;  %v3605_v26 = vcombine.low %v906_v7, %v914_v9  ;;  %v923_v9 = vld [vmem:[#allocation11 + $0x2b0] sm:$0xff] }
 0x62e   :  { %2041 = vmatpush1.bf16.msra.mxu1 %v3583_v15  ;;  %2084 = vmatpush1.bf16.msra.mxu0 %v3585_v18  ;;  %v897_v15 = vld [vmem:[#allocation11 + $0x1e0] sm:$0xff]  ;;  %v890_v18 = vld [vmem:[#allocation11 + $0x1a8] sm:$0xff] }
 0x62f   :  { %2042 = vmatprep.subr.bf16.mxu1 %v3568_v19  ;;  %2085 = vmatprep.subr.bf16.mxu0 %v3570_v25  ;;  %v898_v19 = vld [vmem:[#allocation11 + $0x1e8] sm:$0xff]  ;;  %v3603_v25 = vcombine.low %v905_v16, %v913_v5  ;;  %v3588_v27 = vcombine.high %v889_v14, %v897_v15 }
 0x630   :  { %v3590_v28 = vcombine.high %v890_v18, %v898_v19  ;;  %v3589_v35 = vcombine.low %v890_v18, %v898_v19  ;;  %v907_v19 = vld [vmem:[#allocation11 + $0x230] sm:$0xff] }
 0x632   :  { %2043 = vmatpush1.bf16.msra.mxu1 %v3567_v30  ;;  %2086 = vmatpush1.bf16.msra.mxu0 %v3569_v31  ;;  %v881_v30 = vld [vmem:[#allocation11 + $0x160] sm:$0xff]  ;;  %v874_v31 = vld [vmem:[#allocation11 + $0x128] sm:$0xff] }
 0x633   :  { %2044 = vmatprep.subr.bf16.mxu1 %v3552_v32  ;;  %2087 = vmatprep.subr.bf16.mxu0 %v3554_v34  ;;  %v882_v32 = vld [vmem:[#allocation11 + $0x168] sm:$0xff]  ;;  %v3587_v34 = vcombine.low %v889_v14, %v897_v15  ;;  %v3572_v37 = vcombine.high %v873_v29, %v881_v30 }
 0x634   :  { %v3574_v38 = vcombine.high %v874_v31, %v882_v32  ;;  %v3573_v44 = vcombine.low %v874_v31, %v882_v32  ;;  %v891_v32 = vld [vmem:[#allocation11 + $0x1b0] sm:$0xff] }
 0x636   :  { %2045 = vmatpush1.bf16.msra.mxu1 %v3551_v40  ;;  %2088 = vmatpush1.bf16.msra.mxu0 %v3553_v41  ;;  %v865_v40 = vld [vmem:[#allocation11 + $0xe0] sm:$0xff]  ;;  %v858_v41 = vld [vmem:[#allocation11 + $0xa8] sm:$0xff] }
 0x637   :  { %2046 = vmatprep.subr.bf16.mxu1 %v3536_v42  ;;  %2089 = vmatprep.subr.bf16.mxu0 %v3538_v43  ;;  %v866_v42 = vld [vmem:[#allocation11 + $0xe8] sm:$0xff]  ;;  %v3571_v43 = vcombine.low %v873_v29, %v881_v30  ;;  %v3556_v45 = vcombine.high %v857_v39, %v865_v40 }
 0x638   :  { %v3558_v46 = vcombine.high %v858_v41, %v866_v42  ;;  %v3557_v0 = vcombine.low %v858_v41, %v866_v42  ;;  %v875_v41 = vld [vmem:[#allocation11 + $0x130] sm:$0xff] }
 0x639   :  { %v883_v42 = vld [vmem:[#allocation11 + $0x170] sm:$0xff] }
 0x63a   :  { %2047 = vmatpush1.bf16.msra.mxu1 %v3535_v50  ;;  %2090 = vmatpush1.bf16.msra.mxu0 %v3537_v52  ;;  %v849_v50 = vld [vmem:[#allocation11 + $0x60] sm:$0xff]  ;;  %v842_v52 = vld [vmem:[#allocation11 + $0x28] sm:$0xff] }
 0x63b   :  { %2118 = vmatprep.subr.bf16.mxu1 %v3652_v23  ;;  %2161 = vmatprep.subr.bf16.mxu0 %v3654_v53  ;;  %v850_v23 = vld [vmem:[#allocation11 + $0x68] sm:$0xff]  ;;  %v3555_v53 = vcombine.low %v857_v39, %v865_v40  ;;  %v3540_v10 = vcombine.high %v841_v6, %v849_v50 }
 0x63c   :  { %v3542_v54 = vcombine.high %v842_v52, %v850_v23  ;;  %v3541_v60 = vcombine.low %v842_v52, %v850_v23  ;;  %v859_v52 = vld [vmem:[#allocation11 + $0xb0] sm:$0xff] }
 0x63d   :  { %2065 = vmatmul.mubr.bf16.vlgmr.msra.gmra.mxu1 %v4759_v49  ;;  %2108 = vmatmul.mubr.bf16.vlgmr.msra.gmra.mxu0 %v4759_v49  ;;  %v867_v23 = vld [vmem:[#allocation11 + $0xf0] sm:$0xff] }
 0x63e   :  { %2119 = vmatpush1.bf16.msra.mxu1 %v3651_v56  ;;  %2162 = vmatpush1.bf16.msra.mxu0 %v3653_v57  ;;  %v963_v56 = vld [vmem:[#allocation11 + $0x3f0] sm:$0xff]  ;;  %v956_v57 = vld [vmem:[#allocation11 + $0x3b8] sm:$0xff] }
 0x63f   :  { %2120 = vmatprep.subr.bf16.mxu1 %v3636_v58  ;;  %2163 = vmatprep.subr.bf16.mxu0 %v3638_v59  ;;  %v964_v58 = vld [vmem:[#allocation11 + $0x3f8] sm:$0xff]  ;;  %v3539_v59 = vcombine.low %v841_v6, %v849_v50  ;;  %v3656_v61 = vcombine.high %v955_v55, %v963_v56  ;;  %v3576_v6 = vcombine.high %v875_v41, %v883_v42 }
 0x640   :  { %2150 = vmatprep.mubr.bf16.mxu1 %v4535_v20  ;;  %2193 = vmatprep.mubr.bf16.mxu0 %v4535_v20  ;;  %v3658_v62 = vcombine.high %v956_v57, %v964_v58  ;;  %v3657_v16 = vcombine.low %v956_v57, %v964_v58  ;;  %v843_v57 = vld [vmem:[#allocation11 + $0x30] sm:$0xff] }
 0x641   :  { %v851_v58 = vld [vmem:[#allocation11 + $0x70] sm:$0xff] }
 0x642   :  { %2121 = vmatpush1.bf16.msra.mxu1 %v3635_v1  ;;  %2164 = vmatpush1.bf16.msra.mxu0 %v3637_v2  ;;  %v947_v1 = vld [vmem:[#allocation11 + $0x370] sm:$0xff]  ;;  %v940_v2 = vld [vmem:[#allocation11 + $0x338] sm:$0xff] }
 0x643   :  { %2122 = vmatprep.subr.bf16.mxu1 %v3620_v3  ;;  %2165 = vmatprep.subr.bf16.mxu0 %v3622_v4  ;;  %v948_v3 = vld [vmem:[#allocation11 + $0x378] sm:$0xff]  ;;  %v3655_v4 = vcombine.low %v955_v55, %v963_v56  ;;  %v3640_v5 = vcombine.high %v939_v63, %v947_v1  ;;  %v3560_v55 = vcombine.high %v859_v52, %v867_v23 }
 0x644   :  { %v3642_v7 = vcombine.high %v940_v2, %v948_v3  ;;  %v3641_v14 = vcombine.low %v940_v2, %v948_v3  ;;  %v3543_v2 = vcombine.low %v843_v57, %v851_v58 }
 0x646   :  { %2123 = vmatpush1.bf16.msra.mxu1 %v3619_v17  ;;  %2166 = vmatpush1.bf16.msra.mxu0 %v3621_v11  ;;  %v931_v17 = vld [vmem:[#allocation11 + $0x2f0] sm:$0xff]  ;;  %v924_v11 = vld [vmem:[#allocation11 + $0x2b8] sm:$0xff] }
 0x647   :  { %2124 = vmatprep.subr.bf16.mxu1 %v3604_v12  ;;  %2167 = vmatprep.subr.bf16.mxu0 %v3606_v13  ;;  %v932_v12 = vld [vmem:[#allocation11 + $0x2f8] sm:$0xff]  ;;  %v3639_v13 = vcombine.low %v939_v63, %v947_v1  ;;  %v3624_v15 = vcombine.high %v923_v9, %v931_v17  ;;  %v3544_v63 = vcombine.high %v843_v57, %v851_v58 }
 0x648   :  { %v3626_v18 = vcombine.high %v924_v11, %v932_v12  ;;  %v3625_v29 = vcombine.low %v924_v11, %v932_v12  ;;  %v4168_v11 = vld [vmem:[#allocation13 + $0x30] sm:$0xff]  }
 0x649   :  { %v4169_v12 = vld [vmem:[#allocation13 + $0xb0] sm:$0xff]  }
 0x64a   :  { %2125 = vmatpush1.bf16.msra.mxu1 %v3603_v25  ;;  %2168 = vmatpush1.bf16.msra.mxu0 %v3605_v26  ;;  %v915_v25 = vld [vmem:[#allocation11 + $0x270] sm:$0xff]  ;;  %v908_v26 = vld [vmem:[#allocation11 + $0x238] sm:$0xff] }
 0x64b   :  { %2126 = vmatprep.subr.bf16.mxu1 %v3588_v27  ;;  %2169 = vmatprep.subr.bf16.mxu0 %v3590_v28  ;;  %v916_v27 = vld [vmem:[#allocation11 + $0x278] sm:$0xff]  ;;  %v3623_v28 = vcombine.low %v923_v9, %v931_v17  ;;  %v3608_v30 = vcombine.high %v907_v19, %v915_v25  ;;  %v4166_v9 = vld [vmem:[#allocation13 + $0x70] sm:$0xff]  }
 0x64c   :  { %v3610_v31 = vcombine.high %v908_v26, %v916_v27  ;;  %v3609_v39 = vcombine.low %v908_v26, %v916_v27  ;;  %v4167_v17 = vld [vmem:[#allocation13 + $0xf0] sm:$0xff]   ;;  %v4176_v26 = vld [vmem:[#allocation13 + $0x20] sm:$0xff]   ;;  %v4178_v27 = vld [vmem:[#allocation13 + $0x58] sm:$0xff]  }
 0x64e   :  { %2127 = vmatpush1.bf16.msra.mxu1 %v3587_v34  ;;  %2170 = vmatpush1.bf16.msra.mxu0 %v3589_v35  ;;  %v899_v34 = vld [vmem:[#allocation11 + $0x1f0] sm:$0xff]  ;;  %v892_v35 = vld [vmem:[#allocation11 + $0x1b8] sm:$0xff] }
 0x64f   :  { %2128 = vmatprep.subr.bf16.mxu1 %v3572_v37  ;;  %2171 = vmatprep.subr.bf16.mxu0 %v3574_v38  ;;  %v900_v37 = vld [vmem:[#allocation11 + $0x1f8] sm:$0xff]  ;;  %v3607_v38 = vcombine.low %v907_v19, %v915_v25  ;;  %v3592_v40 = vcombine.high %v891_v32, %v899_v34  ;;  %v4174_v19 = vld [vmem:[#allocation13 + $0x60] sm:$0xff]  }
 0x650   :  { %v4175_v25 = vld [vmem:[#allocation13 + $0xe0] sm:$0xff]  }
 0x652   :  { %2129 = vmatpush1.bf16.msra.mxu1 %v3571_v43  ;;  %2172 = vmatpush1.bf16.msra.mxu0 %v3573_v44  ;;  %v876_v43 = vld [vmem:[#allocation11 + $0x138] sm:$0xff] }
 0x653   :  { %2130 = vmatprep.subr.bf16.mxu1 %v3556_v45  ;;  %2173 = vmatprep.subr.bf16.mxu0 %v3558_v46  ;;  %v884_v44 = vld [vmem:[#allocation11 + $0x178] sm:$0xff]  ;;  %v3591_v45 = vcombine.low %v891_v32, %v899_v34  ;;  %v3593_v46 = vcombine.low %v892_v35, %v900_v37  ;;  %v4183_v32 = vld [vmem:[#allocation13 + $0xd0] sm:$0xff]  }
 0x654   :  { %v3578_v50 = vcombine.high %v876_v43, %v884_v44  ;;  %v4184_v34 = vld [vmem:[#allocation13 + $0x10] sm:$0xff]  }
 0x656   :  { %2131 = vmatpush1.bf16.msra.mxu1 %v3555_v53  ;;  %2174 = vmatpush1.bf16.msra.mxu0 %v3557_v0  ;;  %v860_v53 = vld [vmem:[#allocation11 + $0xb8] sm:$0xff] }
 0x657   :  { %2132 = vmatprep.subr.bf16.mxu1 %v3540_v10  ;;  %2175 = vmatprep.subr.bf16.mxu0 %v3542_v54  ;;  %v868_v0 = vld [vmem:[#allocation11 + $0xf8] sm:$0xff]  ;;  %v3575_v10 = vcombine.low %v875_v41, %v883_v42  ;;  %v3577_v54 = vcombine.low %v876_v43, %v884_v44  ;;  %v4191_v41 = vld [vmem:[#allocation13 + $0xc0] sm:$0xff]  }
 0x658   :  { %v3562_v56 = vcombine.high %v860_v53, %v868_v0  ;;  %v4192_v42 = vld [vmem:[#allocation13] sm:$0xff]   ;;  %v4194_v44 = vld [vmem:[#allocation13 + $0x178] sm:$0xff]  }
 0x659   :  { %v4193_v43 = vld [vmem:[#allocation13 + $0x80] sm:$0xff]  }
 0x65a   :  { %2133 = vmatpush1.bf16.msra.mxu1 %v3539_v59  ;;  %2176 = vmatpush1.bf16.msra.mxu0 %v3541_v60  ;;  %v844_v59 = vld [vmem:[#allocation11 + $0x38] sm:$0xff] }
 0x65b   :  { %2204 = vmatprep.subr.bf16.mxu1 %v3656_v61  ;;  %2247 = vmatprep.subr.bf16.mxu0 %v3658_v62  ;;  %v852_v60 = vld [vmem:[#allocation11 + $0x78] sm:$0xff]  ;;  %v3559_v61 = vcombine.low %v859_v52, %v867_v23  ;;  %v3561_v62 = vcombine.low %v860_v53, %v868_v0 }
 0x65c   :  { %v3546_v1 = vcombine.high %v844_v59, %v852_v60  ;;  %v3545_v3 = vcombine.low %v844_v59, %v852_v60 }
 0x65d   :  { %2151 = vmatmul.mubr.bf16.vlgmr.msra.gmra.mxu1 %v4759_v49  ;;  %2194 = vmatmul.mubr.bf16.vlgmr.msra.gmra.mxu0 %v4759_v49 }
 0x65e   :  { %2205 = vmatpush1.bf16.msra.mxu1 %v3655_v4  ;;  %2248 = vmatpush1.bf16.msra.mxu0 %v3657_v16  ;;  %v4162_v4 = vld [vmem:[#allocation13 + $0x78] sm:$0xff]  }
 0x65f   :  { %2206 = vmatprep.subr.bf16.mxu1 %v3640_v5  ;;  %2249 = vmatprep.subr.bf16.mxu0 %v3642_v7  ;;  %v4163_v16 = vld [vmem:[#allocation13 + $0xf8] sm:$0xff]  }
 0x660   :  { %2236 = vmatprep.mubr.bf16.mxu1 %v4535_v20  ;;  %2279 = vmatprep.mubr.bf16.mxu0 %v4535_v20  ;;  %v3594_v20 = vcombine.high %v892_v35, %v900_v37  ;;  %v4164_v5 = vld [vmem:[#allocation13 + $0x38] sm:$0xff]   ;;  %v4185_v35 = vld [vmem:[#allocation13 + $0x90] sm:$0xff]   ;;  %v4186_v37 = vld [vmem:[#allocation13 + $0x48] sm:$0xff]  }
 0x661   :  { %v4165_v7 = vld [vmem:[#allocation13 + $0xb8] sm:$0xff]  }
 0x662   :  { %2207 = vmatpush1.bf16.msra.mxu1 %v3639_v13  ;;  %2250 = vmatpush1.bf16.msra.mxu0 %v3641_v14  ;;  %v4170_v13 = vld [vmem:[#allocation13 + $0x68] sm:$0xff]  }
 0x663   :  { %2208 = vmatprep.subr.bf16.mxu1 %v3624_v15  ;;  %2251 = vmatprep.subr.bf16.mxu0 %v3626_v18  ;;  %v4171_v14 = vld [vmem:[#allocation13 + $0xe8] sm:$0xff]  }
 0x664   :  { %v4172_v15 = vld [vmem:[#allocation13 + $0x28] sm:$0xff]  }
 0x665   :  { %v4173_v18 = vld [vmem:[#allocation13 + $0xa8] sm:$0xff]  }
 0x666   :  { %2209 = vmatpush1.bf16.msra.mxu1 %v3623_v28  ;;  %2252 = vmatpush1.bf16.msra.mxu0 %v3625_v29  ;;  %v4179_v28 = vld [vmem:[#allocation13 + $0xd8] sm:$0xff]  }
 0x667   :  { %2210 = vmatprep.subr.bf16.mxu1 %v3608_v30  ;;  %2253 = vmatprep.subr.bf16.mxu0 %v3610_v31  ;;  %v4180_v29 = vld [vmem:[#allocation13 + $0x18] sm:$0xff]   ;;  %v4182_v31 = vld [vmem:[#allocation13 + $0x50] sm:$0xff]  }
 0x668   :  { %v4181_v30 = vld [vmem:[#allocation13 + $0x98] sm:$0xff]  }
 0x66a   :  { %2211 = vmatpush1.bf16.msra.mxu1 %v3607_v38  ;;  %2254 = vmatpush1.bf16.msra.mxu0 %v3609_v39  ;;  %v4187_v38 = vld [vmem:[#allocation13 + $0xc8] sm:$0xff]  }
 0x66b   :  { %2212 = vmatprep.subr.bf16.mxu1 %v3592_v40  ;;  %2255 = vmatprep.subr.bf16.mxu0 %v3594_v20  ;;  %v4188_v39 = vld [vmem:[#allocation13 + $0x8] sm:$0xff]   ;;  %v4190_v20 = vld [vmem:[#allocation13 + $0x40] sm:$0xff]  }
 0x66c   :  { %v4189_v40 = vld [vmem:[#allocation13 + $0x88] sm:$0xff]  }
 0x66e   :  { %2213 = vmatpush1.bf16.msra.mxu1 %v3591_v45  ;;  %2256 = vmatpush1.bf16.msra.mxu0 %v3593_v46  ;;  %v4195_v45 = vld [vmem:[#allocation13 + $0x1f8] sm:$0xff]   ;;  %v4775_v46 = vld [vmem:[#allocation16] sm:$0xff] }
 0x66f   :  { %2214 = vmatprep.subr.bf16.mxu1 %v3576_v6  ;;  %2257 = vmatprep.subr.bf16.mxu0 %v3578_v50  ;;  %v1233_v52 = vrot.slane %v4775_v46, %v4675_v22  ;;  %v1241_v23 = vrot.slane %v4775_v46, %v4725_v51  ;;  %v1229_v53 = vrot.slane %v4775_v46, %v4680_v24 }
 0x670   :  { %v1237_v0 = vrot.slane %v4775_v46, %v4708_v8 }
 0x672   :  { %2215 = vmatpush1.bf16.msra.mxu1 %v3575_v10  ;;  %2258 = vmatpush1.bf16.msra.mxu0 %v3577_v54 }
 0x673   :  { %2216 = vmatprep.subr.bf16.mxu1 %v3560_v55  ;;  %2259 = vmatprep.subr.bf16.mxu0 %v3562_v56 }
 0x676   :  { %2217 = vmatpush1.bf16.msra.mxu1 %v3559_v61  ;;  %2260 = vmatpush1.bf16.msra.mxu0 %v3561_v62 }
 0x677   :  { %2218 = vmatprep.subr.bf16.mxu1 %v3544_v63  ;;  %2261 = vmatprep.subr.bf16.mxu0 %v3546_v1 }
 0x67a   :  { %2219 = vmatpush1.bf16.msra.mxu1 %v3543_v2  ;;  %2262 = vmatpush1.bf16.msra.mxu0 %v3545_v3 }
 0x67b   :  { %3832 = vmatprep.subr.bf16.mxu1 %v4162_v4  ;;  %3854 = vmatprep.subr.bf16.mxu0 %v4163_v16 }
 0x67d   :  { %2237 = vmatmul.mubr.bf16.vlgmr.msra.gmra.mxu1 %v4759_v49  ;;  %2280 = vmatmul.mubr.bf16.vlgmr.msra.gmra.mxu0 %v4759_v49  ;;  %v4177_v49 = vld [vmem:[#allocation13 + $0xa0] sm:$0xff]  }
 0x67e   :  { %3833 = vmatpush3.bf16.msra.mxu1 %v4164_v5  ;;  %3855 = vmatpush3.bf16.msra.mxu0 %v4165_v7 }
 0x67f   :  { %3834 = vmatprep.subr.bf16.mxu1 %v4166_v9  ;;  %3856 = vmatprep.subr.bf16.mxu0 %v4167_v17 }
 0x682   :  { %3835 = vmatpush3.bf16.msra.mxu1 %v4168_v11  ;;  %3857 = vmatpush3.bf16.msra.mxu0 %v4169_v12 }
 0x683   :  { %3836 = vmatprep.subr.bf16.mxu1 %v4170_v13  ;;  %3858 = vmatprep.subr.bf16.mxu0 %v4171_v14 }
 0x686   :  { %3837 = vmatpush3.bf16.msra.mxu1 %v4172_v15  ;;  %3859 = vmatpush3.bf16.msra.mxu0 %v4173_v18  ;;  %v4196_v15 = vld [vmem:[#allocation13 + $0x138] sm:$0xff]  }
 0x687   :  { %3838 = vmatprep.subr.bf16.mxu1 %v4174_v19  ;;  %3860 = vmatprep.subr.bf16.mxu0 %v4175_v25  ;;  %v4197_v18 = vld [vmem:[#allocation13 + $0x1b8] sm:$0xff]  }
 0x68a   :  { %3839 = vmatpush3.bf16.msra.mxu1 %v4176_v26  ;;  %3861 = vmatpush3.bf16.msra.mxu0 %v4177_v49  ;;  %v4198_v26 = vld [vmem:[#allocation13 + $0x170] sm:$0xff]  }
 0x68b   :  { %3840 = vmatprep.subr.bf16.mxu1 %v4178_v27  ;;  %3862 = vmatprep.subr.bf16.mxu0 %v4179_v28  ;;  %v4199_v49 = vld [vmem:[#allocation13 + $0x1f0] sm:$0xff]  }
 0x68c   :  { %v4200_v27 = vld [vmem:[#allocation13 + $0x130] sm:$0xff]  }
 0x68d   :  { %v4201_v28 = vld [vmem:[#allocation13 + $0x1b0] sm:$0xff]  }
 0x68e   :  { %3841 = vmatpush3.bf16.msra.mxu1 %v4180_v29  ;;  %3863 = vmatpush3.bf16.msra.mxu0 %v4181_v30  ;;  %v4202_v29 = vld [vmem:[#allocation13 + $0x168] sm:$0xff]  }
 0x68f   :  { %3842 = vmatprep.subr.bf16.mxu1 %v4182_v31  ;;  %3864 = vmatprep.subr.bf16.mxu0 %v4183_v32  ;;  %v4203_v30 = vld [vmem:[#allocation13 + $0x1e8] sm:$0xff]  }
 0x690   :  { %v4204_v31 = vld [vmem:[#allocation13 + $0x128] sm:$0xff]  }
 0x691   :  { %v4205_v32 = vld [vmem:[#allocation13 + $0x1a8] sm:$0xff]  }
 0x692   :  { %3843 = vmatpush3.bf16.msra.mxu1 %v4184_v34  ;;  %3865 = vmatpush3.bf16.msra.mxu0 %v4185_v35  ;;  %v4206_v34 = vld [vmem:[#allocation13 + $0x160] sm:$0xff]  }
 0x693   :  { %3844 = vmatprep.subr.bf16.mxu1 %v4186_v37  ;;  %3866 = vmatprep.subr.bf16.mxu0 %v4187_v38  ;;  %v4207_v35 = vld [vmem:[#allocation13 + $0x1e0] sm:$0xff]  }
 0x694   :  { %v4208_v37 = vld [vmem:[#allocation13 + $0x120] sm:$0xff]  }
 0x695   :  { %v4209_v38 = vld [vmem:[#allocation13 + $0x1a0] sm:$0xff]  }
 0x696   :  { %3845 = vmatpush3.bf16.msra.mxu1 %v4188_v39  ;;  %3867 = vmatpush3.bf16.msra.mxu0 %v4189_v40  ;;  %v4210_v39 = vld [vmem:[#allocation13 + $0x158] sm:$0xff]  }
 0x697   :  { %3846 = vmatprep.subr.bf16.mxu1 %v4190_v20  ;;  %3868 = vmatprep.subr.bf16.mxu0 %v4191_v41  ;;  %v4211_v40 = vld [vmem:[#allocation13 + $0x1d8] sm:$0xff]  }
 0x698   :  { %v4212_v20 = vld [vmem:[#allocation13 + $0x118] sm:$0xff]  }
 0x699   :  { %v4213_v41 = vld [vmem:[#allocation13 + $0x198] sm:$0xff]  }
 0x69a   :  { %3847 = vmatpush3.bf16.msra.mxu1 %v4192_v42  ;;  %3869 = vmatpush3.bf16.msra.mxu0 %v4193_v43  ;;  %v4214_v42 = vld [vmem:[#allocation13 + $0x150] sm:$0xff]  }
 0x69b   :  { %3876 = vmatprep.subr.bf16.mxu1 %v4194_v44  ;;  %3898 = vmatprep.subr.bf16.mxu0 %v4195_v45  ;;  %v4215_v43 = vld [vmem:[#allocation13 + $0x1d0] sm:$0xff]   ;;  %v4786_v44 = vsub.s32 7, %v4672_v21  ;;  %v4789_v45 = vsub.s32 6, %v4672_v21  ;;  %v1245_v21 = vrot.slane %v4775_v46, %v4742_v33 }
 0x6dd   :  { %v1980_v6 = vpop.f32.mrf.mxu1  ;;  %v2023_v50 = vpop.f32.mrf.mxu0 }
 0x6de   :  { %v1981_v61 = vadd.f32 %v1980_v6, %v1229_v53  ;;  %v2024_v62 = vadd.f32 %v2023_v50, %v1237_v0  ;;  %v4216_v6 = vld [vmem:[#allocation13 + $0x110] sm:$0xff]  }
 0x6df   :  { %v1982_v10 = vpop.f32.mrf.mxu1  ;;  %v2025_v54 = vpop.f32.mrf.mxu0  ;;  %v4217_v50 = vld [vmem:[#allocation13 + $0x190] sm:$0xff]  }
 0x6e0   :  { %v1983_v57 = vadd.f32 %v1982_v10, %v1233_v52  ;;  %v2026_v58 = vadd.f32 %v2025_v54, %v1241_v23  ;;  %v2290_v11 = vmax.f32 %v1981_v61, 0.0  ;;  %v2292_v12 = vmax.f32 %v2024_v62, 0.0  ;;  %v4222_v62 = vld [vmem:[#allocation13 + $0x140] sm:$0xff]  }
 0x6e1   :  { %v1984_v55 = vpop.f32.mrf.mxu1  ;;  %v2027_v56 = vpop.f32.mrf.mxu0  ;;  %v1249_v10 = vrot.slane %v4775_v46, %v4747_v36  ;;  %v1257_v54 = vrot.slane %v4775_v46, %v4786_v44 }
 0x6e2   :  { %v1985_v59 = vadd.f32 %v1984_v55, %v1229_v53  ;;  %v2028_v60 = vadd.f32 %v2027_v56, %v1237_v0  ;;  %v2291_v5 = vmax.f32 %v1983_v57, 0.0  ;;  %v2293_v7 = vmax.f32 %v2026_v58, 0.0  ;;  %v4218_v53 = vld [vmem:[#allocation13 + $0x148] sm:$0xff]  }
 0x6e3   :  { %v1986_v63 = vpop.f32.mrf.mxu1  ;;  %v2029_v1 = vpop.f32.mrf.mxu0  ;;  %v4219_v0 = vld [vmem:[#allocation13 + $0x1c8] sm:$0xff]   ;;  %v1253_v55 = vrot.slane %v4775_v46, %v4789_v45 }
 0x6e4   :  { %v1987_v2 = vadd.f32 %v1986_v63, %v1233_v52  ;;  %v2030_v3 = vadd.f32 %v2029_v1, %v1241_v23  ;;  %v2306_v4 = vmax.f32 %v1985_v59, 0.0  ;;  %v2308_v16 = vmax.f32 %v2028_v60, 0.0  ;;  %v4220_v58 = vld [vmem:[#allocation13 + $0x108] sm:$0xff]   ;;  %v4223_v63 = vld [vmem:[#allocation13 + $0x1c0] sm:$0xff]  }
 0x6e5   :  { %v4221_v59 = vld [vmem:[#allocation13 + $0x188] sm:$0xff]  }
 0x6e6   :  { %v2307_v9 = vmax.f32 %v1987_v2, 0.0  ;;  %v2309_v17 = vmax.f32 %v2030_v3, 0.0  ;;  %v2322_v19 = vpack.c.bf16 %v2306_v4, %v2290_v11  ;;  %v2324_v25 = vpack.c.bf16 %v2308_v16, %v2292_v12  ;;  %v4224_v11 = vld [vmem:[#allocation13 + $0x100] sm:$0xff]  }
 0x6e7   :  { %v4225_v12 = vld [vmem:[#allocation13 + $0x180] sm:$0xff]  }
 0x6e8   :  { %v2323_v13 = vpack.c.bf16 %v2307_v9, %v2291_v5  ;;  %v2325_v14 = vpack.c.bf16 %v2309_v17, %v2293_v7 }
 0x6ea   :  { %3142 = vmatprep.mubr.bf16.mxu1 %v2323_v13  ;;  %3183 = vmatprep.mubr.bf16.mxu0 %v2325_v14 }
 0x6eb   :  { %3143 = vmatmul.mubr.bf16.vlgmr.msra.gmra.mxu1 %v2322_v19  ;;  %3184 = vmatmul.mubr.bf16.vlgmr.msra.gmra.mxu0 %v2324_v25 }
 0x6ec   :  { %3877 = vmatpush3.bf16.msra.mxu1 %v4196_v15  ;;  %3899 = vmatpush3.bf16.msra.mxu0 %v4197_v18  ;;  %v4226_v15 = vld [vmem:[#allocation13 + $0x278] sm:$0xff]  }
 0x6ed   :  { %3878 = vmatprep.subr.bf16.mxu1 %v4198_v26  ;;  %3900 = vmatprep.subr.bf16.mxu0 %v4199_v49  ;;  %v4227_v18 = vld [vmem:[#allocation13 + $0x2f8] sm:$0xff]  }
 0x6f0   :  { %3879 = vmatpush3.bf16.msra.mxu1 %v4200_v27  ;;  %3901 = vmatpush3.bf16.msra.mxu0 %v4201_v28 }
 0x6f1   :  { %3880 = vmatprep.subr.bf16.mxu1 %v4202_v29  ;;  %3902 = vmatprep.subr.bf16.mxu0 %v4203_v30 }
 0x6f4   :  { %3881 = vmatpush3.bf16.msra.mxu1 %v4204_v31  ;;  %3903 = vmatpush3.bf16.msra.mxu0 %v4205_v32  ;;  %v4228_v31 = vld [vmem:[#allocation13 + $0x238] sm:$0xff]  }
 0x6f5   :  { %3882 = vmatprep.subr.bf16.mxu1 %v4206_v34  ;;  %3904 = vmatprep.subr.bf16.mxu0 %v4207_v35  ;;  %v4229_v32 = vld [vmem:[#allocation13 + $0x2b8] sm:$0xff]  }
 0x6f8   :  { %3883 = vmatpush3.bf16.msra.mxu1 %v4208_v37  ;;  %3905 = vmatpush3.bf16.msra.mxu0 %v4209_v38  ;;  %v4230_v37 = vld [vmem:[#allocation13 + $0x270] sm:$0xff]  }
 0x6f9   :  { %3884 = vmatprep.subr.bf16.mxu1 %v4210_v39  ;;  %3906 = vmatprep.subr.bf16.mxu0 %v4211_v40  ;;  %v4231_v38 = vld [vmem:[#allocation13 + $0x2f0] sm:$0xff]  }
 0x6fa   :  { %v4232_v39 = vld [vmem:[#allocation13 + $0x230] sm:$0xff]  }
 0x6fb   :  { %v4233_v40 = vld [vmem:[#allocation13 + $0x2b0] sm:$0xff]  }
 0x6fc   :  { %3885 = vmatpush3.bf16.msra.mxu1 %v4212_v20  ;;  %3907 = vmatpush3.bf16.msra.mxu0 %v4213_v41  ;;  %v4234_v20 = vld [vmem:[#allocation13 + $0x268] sm:$0xff]  }
 0x6fd   :  { %v2066_v52 = vpop.f32.mrf.mxu1  ;;  %v2109_v23 = vpop.f32.mrf.mxu0  ;;  %3886 = vmatprep.subr.bf16.mxu1 %v4214_v42  ;;  %3908 = vmatprep.subr.bf16.mxu0 %v4215_v43  ;;  %v4235_v41 = vld [vmem:[#allocation13 + $0x2e8] sm:$0xff]  }
 0x6fe   :  { %v2067_v16 = vadd.f32 %v2066_v52, %v1245_v21  ;;  %v2110_v5 = vadd.f32 %v2109_v23, %v1253_v55  ;;  %v4236_v42 = vld [vmem:[#allocation13 + $0x228] sm:$0xff]   ;;  %v4240_v52 = vld [vmem:[#allocation13 + $0x220] sm:$0xff]  }
 0x6ff   :  { %v2068_v56 = vpop.f32.mrf.mxu1  ;;  %v2111_v57 = vpop.f32.mrf.mxu0  ;;  %v4237_v43 = vld [vmem:[#allocation13 + $0x2a8] sm:$0xff]   ;;  %v4241_v23 = vld [vmem:[#allocation13 + $0x2a0] sm:$0xff]  }
 0x700   :  { %3887 = vmatpush3.bf16.msra.mxu1 %v4216_v6  ;;  %3909 = vmatpush3.bf16.msra.mxu0 %v4217_v50  ;;  %v2069_v1 = vadd.f32 %v2068_v56, %v1249_v10  ;;  %v2112_v2 = vadd.f32 %v2111_v57, %v1257_v54  ;;  %v2294_v27 = vmax.f32 %v2067_v16, 0.0  ;;  %v2296_v28 = vmax.f32 %v2110_v5, 0.0  ;;  %v4238_v6 = vld [vmem:[#allocation13 + $0x260] sm:$0xff]   ;;  %v4799_v56 = vld [vmem:[#allocation16 + $0x8] sm:$0xff]  ;;  %v4248_v57 = vld [vmem:[#allocation13 + $0x210] sm:$0xff]  }
 0x701   :  { %v2070_v60 = vpop.f32.mrf.mxu1  ;;  %v2113_v61 = vpop.f32.mrf.mxu0  ;;  %3888 = vmatprep.subr.bf16.mxu1 %v4218_v53  ;;  %3910 = vmatprep.subr.bf16.mxu0 %v4219_v0  ;;  %v4239_v50 = vld [vmem:[#allocation13 + $0x2e0] sm:$0xff]   ;;  %v4242_v53 = vld [vmem:[#allocation13 + $0x258] sm:$0xff]   ;;  %v4252_v5 = vld [vmem:[#allocation13 + $0x208] sm:$0xff]  }
 0x702   :  { %v2071_v3 = vadd.f32 %v2070_v60, %v1245_v21  ;;  %v2114_v4 = vadd.f32 %v2113_v61, %v1253_v55  ;;  %v2295_v19 = vmax.f32 %v2069_v1, 0.0  ;;  %v2297_v25 = vmax.f32 %v2112_v2, 0.0  ;;  %v4243_v0 = vld [vmem:[#allocation13 + $0x2d8] sm:$0xff]   ;;  %v4246_v21 = vld [vmem:[#allocation13 + $0x250] sm:$0xff]   ;;  %v4250_v61 = vld [vmem:[#allocation13 + $0x248] sm:$0xff]  }
 0x703   :  { %v2072_v7 = vpop.f32.mrf.mxu1  ;;  %v2115_v46 = vpop.f32.mrf.mxu0  ;;  %v4247_v55 = vld [vmem:[#allocation13 + $0x2d0] sm:$0xff]   ;;  %v1273_v1 = vrot.slane %v4799_v56, %v4725_v51  ;;  %v1261_v2 = vrot.slane %v4799_v56, %v4680_v24 }
 0x704   :  { %v2073_v9 = vadd.f32 %v2072_v7, %v1249_v10  ;;  %v2116_v17 = vadd.f32 %v2115_v46, %v1257_v54  ;;  %3889 = vmatpush3.bf16.msra.mxu1 %v4220_v58  ;;  %3911 = vmatpush3.bf16.msra.mxu0 %v4221_v59  ;;  %v2310_v13 = vmax.f32 %v2071_v3, 0.0  ;;  %v2312_v14 = vmax.f32 %v2114_v4, 0.0  ;;  %v4244_v10 = vld [vmem:[#allocation13 + $0x218] sm:$0xff]   ;;  %v4249_v58 = vld [vmem:[#allocation13 + $0x290] sm:$0xff]   ;;  %v4253_v7 = vld [vmem:[#allocation13 + $0x288] sm:$0xff]  }
 0x705   :  { %3890 = vmatprep.subr.bf16.mxu1 %v4222_v62  ;;  %3912 = vmatprep.subr.bf16.mxu0 %v4223_v63  ;;  %v4245_v54 = vld [vmem:[#allocation13 + $0x298] sm:$0xff]   ;;  %v4251_v62 = vld [vmem:[#allocation13 + $0x2c8] sm:$0xff]   ;;  %v1265_v63 = vrot.slane %v4799_v56, %v4675_v22  ;;  %v1269_v3 = vrot.slane %v4799_v56, %v4708_v8  ;;  %v4254_v22 = vld [vmem:[#allocation13 + $0x240] sm:$0xff]  }
 0x706   :  { %v2311_v26 = vmax.f32 %v2073_v9, 0.0  ;;  %v2313_v49 = vmax.f32 %v2116_v17, 0.0  ;;  %v2326_v34 = vpack.c.bf16 %v2310_v13, %v2294_v27  ;;  %v2328_v35 = vpack.c.bf16 %v2312_v14, %v2296_v28  ;;  %v4255_v17 = vld [vmem:[#allocation13 + $0x2c0] sm:$0xff]   ;;  %v4258_v28 = vld [vmem:[#allocation13 + $0x378] sm:$0xff]  }
 0x708   :  { %v2327_v29 = vpack.c.bf16 %v2311_v26, %v2295_v19  ;;  %v2329_v30 = vpack.c.bf16 %v2313_v49, %v2297_v25  ;;  %3891 = vmatpush3.bf16.msra.mxu1 %v4224_v11  ;;  %3913 = vmatpush3.bf16.msra.mxu0 %v4225_v12  ;;  %v4256_v25 = vld [vmem:[#allocation13 + $0x200] sm:$0xff]  }
 0x709   :  { %3920 = vmatprep.subr.bf16.mxu1 %v4226_v15  ;;  %3942 = vmatprep.subr.bf16.mxu0 %v4227_v18  ;;  %v4257_v26 = vld [vmem:[#allocation13 + $0x280] sm:$0xff]  }
 0x70a   :  { %3224 = vmatprep.mubr.bf16.mxu1 %v2327_v29  ;;  %3265 = vmatprep.mubr.bf16.mxu0 %v2329_v30  ;;  %v4259_v29 = vld [vmem:[#allocation13 + $0x3f8] sm:$0xff]  }
 0x70b   :  { %3225 = vmatmul.mubr.bf16.vlgmr.msra.gmra.mxu1 %v2326_v34  ;;  %3266 = vmatmul.mubr.bf16.vlgmr.msra.gmra.mxu0 %v2328_v35 }
 0x70c   :  { %3921 = vmatpush3.bf16.msra.mxu1 %v4228_v31  ;;  %3943 = vmatpush3.bf16.msra.mxu0 %v4229_v32 }
 0x70d   :  { %3922 = vmatprep.subr.bf16.mxu1 %v4230_v37  ;;  %3944 = vmatprep.subr.bf16.mxu0 %v4231_v38 }
 0x710   :  { %3923 = vmatpush3.bf16.msra.mxu1 %v4232_v39  ;;  %3945 = vmatpush3.bf16.msra.mxu0 %v4233_v40  ;;  %v4260_v40 = vld [vmem:[#allocation13 + $0x338] sm:$0xff]  }
 0x711   :  { %3924 = vmatprep.subr.bf16.mxu1 %v4234_v20  ;;  %3946 = vmatprep.subr.bf16.mxu0 %v4235_v41  ;;  %v4261_v20 = vld [vmem:[#allocation13 + $0x3b8] sm:$0xff]  }
 0x714   :  { %3925 = vmatpush3.bf16.msra.mxu1 %v4236_v42  ;;  %3947 = vmatpush3.bf16.msra.mxu0 %v4237_v43  ;;  %v4262_v43 = vld [vmem:[#allocation13 + $0x370] sm:$0xff]  }
 0x715   :  { %3926 = vmatprep.subr.bf16.mxu1 %v4238_v6  ;;  %3948 = vmatprep.subr.bf16.mxu0 %v4239_v50  ;;  %v4263_v6 = vld [vmem:[#allocation13 + $0x3f0] sm:$0xff]  }
 0x716   :  { %v4264_v50 = vld [vmem:[#allocation13 + $0x330] sm:$0xff]  }
 0x718   :  { %3927 = vmatpush3.bf16.msra.mxu1 %v4240_v52  ;;  %3949 = vmatpush3.bf16.msra.mxu0 %v4241_v23  ;;  %v4265_v52 = vld [vmem:[#allocation13 + $0x3b0] sm:$0xff]   ;;  %v4266_v23 = vld [vmem:[#allocation13 + $0x368] sm:$0xff]  }
 0x719   :  { %3928 = vmatprep.subr.bf16.mxu1 %v4242_v53  ;;  %3950 = vmatprep.subr.bf16.mxu0 %v4243_v0  ;;  %v4267_v53 = vld [vmem:[#allocation13 + $0x3e8] sm:$0xff]  }
 0x71a   :  { %v4268_v0 = vld [vmem:[#allocation13 + $0x328] sm:$0xff]  }
 0x71c   :  { %3929 = vmatpush3.bf16.msra.mxu1 %v4244_v10  ;;  %3951 = vmatpush3.bf16.msra.mxu0 %v4245_v54  ;;  %v4269_v10 = vld [vmem:[#allocation13 + $0x3a8] sm:$0xff]   ;;  %v4270_v54 = vld [vmem:[#allocation13 + $0x360] sm:$0xff]  }
 0x71d   :  { %v2152_v59 = vpop.f32.mrf.mxu1  ;;  %v2195_v60 = vpop.f32.mrf.mxu0  ;;  %3930 = vmatprep.subr.bf16.mxu1 %v4246_v21  ;;  %3952 = vmatprep.subr.bf16.mxu0 %v4247_v55  ;;  %v4271_v21 = vld [vmem:[#allocation13 + $0x3e0] sm:$0xff]  }
 0x71e   :  { %v2153_v24 = vadd.f32 %v2152_v59, %v1261_v2  ;;  %v2196_v14 = vadd.f32 %v2195_v60, %v1269_v3  ;;  %v4272_v55 = vld [vmem:[#allocation13 + $0x320] sm:$0xff]   ;;  %v4275_v59 = vld [vmem:[#allocation13 + $0x3d8] sm:$0xff]  }
 0x71f   :  { %v2154_v4 = vpop.f32.mrf.mxu1  ;;  %v2197_v16 = vpop.f32.mrf.mxu0  ;;  %v4276_v60 = vld [vmem:[#allocation13 + $0x318] sm:$0xff]  }
 0x720   :  { %3931 = vmatpush3.bf16.msra.mxu1 %v4248_v57  ;;  %3953 = vmatpush3.bf16.msra.mxu0 %v4249_v58  ;;  %v2155_v11 = vadd.f32 %v2154_v4, %v1265_v63  ;;  %v2198_v51 = vadd.f32 %v2197_v16, %v1273_v1  ;;  %v2298_v35 = vmax.f32 %v2153_v24, 0.0  ;;  %v2300_v37 = vmax.f32 %v2196_v14, 0.0  ;;  %v4273_v57 = vld [vmem:[#allocation13 + $0x3a0] sm:$0xff]   ;;  %v4274_v58 = vld [vmem:[#allocation13 + $0x358] sm:$0xff]   ;;  %v4282_v16 = vld [vmem:[#allocation13 + $0x348] sm:$0xff]  }
 0x721   :  { %v2156_v46 = vpop.f32.mrf.mxu1  ;;  %v2199_v9 = vpop.f32.mrf.mxu0  ;;  %3932 = vmatprep.subr.bf16.mxu1 %v4250_v61  ;;  %3954 = vmatprep.subr.bf16.mxu0 %v4251_v62  ;;  %v4277_v61 = vld [vmem:[#allocation13 + $0x398] sm:$0xff]   ;;  %v4278_v62 = vld [vmem:[#allocation13 + $0x350] sm:$0xff]   ;;  %v4287_v14 = vld [vmem:[#allocation13 + $0x3c0] sm:$0xff]  }
 0x722   :  { %v2157_v12 = vadd.f32 %v2156_v46, %v1261_v2  ;;  %v2200_v13 = vadd.f32 %v2199_v9, %v1269_v3  ;;  %v2299_v30 = vmax.f32 %v2155_v11, 0.0  ;;  %v2301_v31 = vmax.f32 %v2198_v51, 0.0  ;;  %v4281_v2 = vld [vmem:[#allocation13 + $0x390] sm:$0xff]   ;;  %v4284_v51 = vld [vmem:[#allocation13 + $0x308] sm:$0xff]  }
 0x723   :  { %v2158_v15 = vpop.f32.mrf.mxu1  ;;  %v2201_v8 = vpop.f32.mrf.mxu0  ;;  %v1289_v46 = vrot.slane %v4799_v56, %v4786_v44  ;;  %v1277_v9 = vrot.slane %v4799_v56, %v4742_v33 }
 0x724   :  { %v2159_v18 = vadd.f32 %v2158_v15, %v1265_v63  ;;  %v2202_v19 = vadd.f32 %v2201_v8, %v1273_v1  ;;  %3933 = vmatpush3.bf16.msra.mxu1 %v4252_v5  ;;  %3955 = vmatpush3.bf16.msra.mxu0 %v4253_v7  ;;  %v2314_v49 = vmax.f32 %v2157_v12, 0.0  ;;  %v2316_v27 = vmax.f32 %v2200_v13, 0.0  ;;  %v4279_v63 = vld [vmem:[#allocation13 + $0x3d0] sm:$0xff]   ;;  %v4283_v5 = vld [vmem:[#allocation13 + $0x3c8] sm:$0xff]  }
 0x725   :  { %3934 = vmatprep.subr.bf16.mxu1 %v4254_v22  ;;  %3956 = vmatprep.subr.bf16.mxu0 %v4255_v17  ;;  %v4280_v1 = vld [vmem:[#allocation13 + $0x310] sm:$0xff]   ;;  %v1281_v7 = vrot.slane %v4799_v56, %v4747_v36  ;;  %v1285_v22 = vrot.slane %v4799_v56, %v4789_v45  ;;  %v4285_v12 = vld [vmem:[#allocation13 + $0x388] sm:$0xff]   ;;  %v4286_v36 = vld [vmem:[#allocation13 + $0x340] sm:$0xff]  }
 0x726   :  { %v2315_v32 = vmax.f32 %v2159_v18, 0.0  ;;  %v2317_v34 = vmax.f32 %v2202_v19, 0.0  ;;  %v2330_v41 = vpack.c.bf16 %v2314_v49, %v2298_v35  ;;  %v2332_v42 = vpack.c.bf16 %v2316_v27, %v2300_v37 }
 0x728   :  { %v2331_v38 = vpack.c.bf16 %v2315_v32, %v2299_v30  ;;  %v2333_v39 = vpack.c.bf16 %v2317_v34, %v2301_v31  ;;  %3935 = vmatpush3.bf16.msra.mxu1 %v4256_v25  ;;  %3957 = vmatpush3.bf16.msra.mxu0 %v4257_v26 }
 0x729   :  { %3964 = vmatprep.subr.bf16.mxu1 %v4258_v28  ;;  %3986 = vmatprep.subr.bf16.mxu0 %v4259_v29  ;;  %v4288_v28 = vld [vmem:[#allocation13 + $0x300] sm:$0xff]  }
 0x72a   :  { %3306 = vmatprep.mubr.bf16.mxu1 %v2331_v38  ;;  %3347 = vmatprep.mubr.bf16.mxu0 %v2333_v39  ;;  %v4289_v29 = vld [vmem:[#allocation13 + $0x380] sm:$0xff]  }
 0x72b   :  { %3307 = vmatmul.mubr.bf16.vlgmr.msra.gmra.mxu1 %v2330_v41  ;;  %3348 = vmatmul.mubr.bf16.vlgmr.msra.gmra.mxu0 %v2332_v42 }
 0x72c   :  { %3965 = vmatpush3.bf16.msra.mxu1 %v4260_v40  ;;  %3987 = vmatpush3.bf16.msra.mxu0 %v4261_v20 }
 0x72d   :  { %3966 = vmatprep.subr.bf16.mxu1 %v4262_v43  ;;  %3988 = vmatprep.subr.bf16.mxu0 %v4263_v6 }
 0x730   :  { %3967 = vmatpush3.bf16.msra.mxu1 %v4264_v50  ;;  %3989 = vmatpush3.bf16.msra.mxu0 %v4265_v52 }
 0x731   :  { %3968 = vmatprep.subr.bf16.mxu1 %v4266_v23  ;;  %3990 = vmatprep.subr.bf16.mxu0 %v4267_v53 }
 0x734   :  { %3969 = vmatpush3.bf16.msra.mxu1 %v4268_v0  ;;  %3991 = vmatpush3.bf16.msra.mxu0 %v4269_v10 }
 0x735   :  { %3970 = vmatprep.subr.bf16.mxu1 %v4270_v54  ;;  %3992 = vmatprep.subr.bf16.mxu0 %v4271_v21 }
 0x738   :  { %3971 = vmatpush3.bf16.msra.mxu1 %v4272_v55  ;;  %3993 = vmatpush3.bf16.msra.mxu0 %v4273_v57 }
 0x739   :  { %3972 = vmatprep.subr.bf16.mxu1 %v4274_v58  ;;  %3994 = vmatprep.subr.bf16.mxu0 %v4275_v59 }
 0x73c   :  { %3973 = vmatpush3.bf16.msra.mxu1 %v4276_v60  ;;  %3995 = vmatpush3.bf16.msra.mxu0 %v4277_v61  ;;  %v4817_v61 = vld [vmem:[#allocation14] sm:$0xff] }
 0x73d   :  { %v2238_v3 = vpop.f32.mrf.mxu1  ;;  %v2281_v4 = vpop.f32.mrf.mxu0  ;;  %3974 = vmatprep.subr.bf16.mxu1 %v4278_v62  ;;  %3996 = vmatprep.subr.bf16.mxu0 %v4279_v63  ;;  %v2341_v62 = vrot.slane %v4817_v61, %v4789_v45 }
 0x73e   :  { %v2239_v33 = vadd.f32 %v2238_v3, %v1277_v9  ;;  %v2282_v25 = vadd.f32 %v2281_v4, %v1285_v22 }
 0x73f   :  { %v2240_v17 = vpop.f32.mrf.mxu1  ;;  %v2283_v11 = vpop.f32.mrf.mxu0 }
 0x740   :  { %3975 = vmatpush3.bf16.msra.mxu1 %v4280_v1  ;;  %3997 = vmatpush3.bf16.msra.mxu0 %v4281_v2  ;;  %v2241_v15 = vadd.f32 %v2240_v17, %v1281_v7  ;;  %v2284_v8 = vadd.f32 %v2283_v11, %v1289_v46  ;;  %v2302_v38 = vmax.f32 %v2239_v33, 0.0  ;;  %v2304_v39 = vmax.f32 %v2282_v25, 0.0 }
 0x741   :  { %v2242_v13 = vpop.f32.mrf.mxu1  ;;  %v2285_v24 = vpop.f32.mrf.mxu0  ;;  %3976 = vmatprep.subr.bf16.mxu1 %v4282_v16  ;;  %3998 = vmatprep.subr.bf16.mxu0 %v4283_v5 }
 0x742   :  { %v2243_v18 = vadd.f32 %v2242_v13, %v1277_v9  ;;  %v2286_v19 = vadd.f32 %v2285_v24, %v1285_v22  ;;  %v2303_v32 = vmax.f32 %v2241_v15, 0.0  ;;  %v2305_v34 = vmax.f32 %v2284_v8, 0.0 }
 0x743   :  { %v2244_v26 = vpop.f32.mrf.mxu1  ;;  %v2287_v56 = vpop.f32.mrf.mxu0 }
 0x744   :  { %v2245_v49 = vadd.f32 %v2244_v26, %v1281_v7  ;;  %v2288_v27 = vadd.f32 %v2287_v56, %v1289_v46  ;;  %3977 = vmatpush3.bf16.msra.mxu1 %v4284_v51  ;;  %3999 = vmatpush3.bf16.msra.mxu0 %v4285_v12  ;;  %v2318_v30 = vmax.f32 %v2243_v18, 0.0  ;;  %v2320_v31 = vmax.f32 %v2286_v19, 0.0 }
 0x745   :  { %3978 = vmatprep.subr.bf16.mxu1 %v4286_v36  ;;  %4000 = vmatprep.subr.bf16.mxu0 %v4287_v14 }
 0x746   :  { %v2319_v35 = vmax.f32 %v2245_v49, 0.0  ;;  %v2321_v37 = vmax.f32 %v2288_v27, 0.0  ;;  %v2334_v41 = vpack.c.bf16 %v2318_v30, %v2302_v38  ;;  %v2336_v42 = vpack.c.bf16 %v2320_v31, %v2304_v39 }
 0x748   :  { %v2335_v40 = vpack.c.bf16 %v2319_v35, %v2303_v32  ;;  %v2337_v20 = vpack.c.bf16 %v2321_v37, %v2305_v34  ;;  %3979 = vmatpush3.bf16.msra.mxu1 %v4288_v28  ;;  %4001 = vmatpush3.bf16.msra.mxu0 %v4289_v29 }
 0x74a   :  { %3388 = vmatprep.mubr.bf16.mxu1 %v2335_v40  ;;  %3429 = vmatprep.mubr.bf16.mxu0 %v2337_v20 }
 0x74b   :  { %3389 = vmatmul.mubr.bf16.vlgmr.msra.gmra.mxu1 %v2334_v41  ;;  %3430 = vmatmul.mubr.bf16.vlgmr.msra.gmra.mxu0 %v2336_v42 }
 0x7ab   :  { %v3848_v43 = vpop.f32.mrf.mxu1  ;;  %v3870_v6 = vpop.f32.mrf.mxu0 }
 0x7ad   :  { %v3849_v50 = vpop.f32.mrf.mxu1  ;;  %v3871_v52 = vpop.f32.mrf.mxu0 }
 0x7ae   :  { %v3850_v63 = vadd.f32 %v3849_v50, %v3848_v43  ;;  %v3872_v7 = vadd.f32 %v3871_v52, %v3870_v6 }
 0x7af   :  { %v3851_v23 = vpop.f32.mrf.mxu1  ;;  %v3873_v53 = vpop.f32.mrf.mxu0 }
 0x7b0   :  { %v3145_v4 = vadd.f32 %v3850_v63, %v2341_v62 }
 0x7b1   :  { %v3852_v0 = vpop.f32.mrf.mxu1  ;;  %v3874_v10 = vpop.f32.mrf.mxu0 }
 0x7b2   :  { %v3853_v16 = vadd.f32 %v3852_v0, %v3851_v23  ;;  %v3186_v22 = vadd.f32 %v3872_v7, %v3145_v4  ;;  %v3875_v51 = vadd.f32 %v3874_v10, %v3873_v53 }
 0x7b4   :  { %v3148_v17 = vadd.f32 %v3853_v16, %v2341_v62 }
 0x7b6   :  { %v3189_v36 = vadd.f32 %v3875_v51, %v3148_v17 }
 0x7cb   :  { %v3892_v54 = vpop.f32.mrf.mxu1  ;;  %v3914_v21 = vpop.f32.mrf.mxu0 }
 0x7cd   :  { %v3893_v55 = vpop.f32.mrf.mxu1  ;;  %v3915_v57 = vpop.f32.mrf.mxu0 }
 0x7ce   :  { %v3894_v46 = vadd.f32 %v3893_v55, %v3892_v54  ;;  %v3916_v14 = vadd.f32 %v3915_v57, %v3914_v21 }
 0x7cf   :  { %v3895_v58 = vpop.f32.mrf.mxu1  ;;  %v3917_v59 = vpop.f32.mrf.mxu0 }
 0x7d0   :  { %v3227_v12 = vadd.f32 %v3894_v46, %v3186_v22 }
 0x7d1   :  { %v3896_v60 = vpop.f32.mrf.mxu1  ;;  %v3918_v1 = vpop.f32.mrf.mxu0 }
 0x7d2   :  { %v3897_v13 = vadd.f32 %v3896_v60, %v3895_v58  ;;  %v3268_v8 = vadd.f32 %v3916_v14, %v3227_v12  ;;  %v3919_v33 = vadd.f32 %v3918_v1, %v3917_v59 }
 0x7d4   :  { %v3230_v18 = vadd.f32 %v3897_v13, %v3189_v36 }
 0x7d6   :  { %v3271_v27 = vadd.f32 %v3919_v33, %v3230_v18 }
 0x7eb   :  { %v3936_v2 = vpop.f32.mrf.mxu1  ;;  %v3958_v3 = vpop.f32.mrf.mxu0 }
 0x7ed   :  { %v3937_v5 = vpop.f32.mrf.mxu1  ;;  %v3959_v9 = vpop.f32.mrf.mxu0 }
 0x7ee   :  { %v3938_v45 = vadd.f32 %v3937_v5, %v3936_v2  ;;  %v3960_v28 = vadd.f32 %v3959_v9, %v3958_v3  ;;  %v3787_v5 = vld [vmem:[#allocation14 + $0x8] ss:$0 sm:$0xff] }
 0x7ef   :  { %v3939_v11 = vpop.f32.mrf.mxu1  ;;  %v3961_v24 = vpop.f32.mrf.mxu0 }
 0x7f0   :  { %v3309_v25 = vadd.f32 %v3938_v45, %v3268_v8 }
 0x7f1   :  { %v3940_v15 = vpop.f32.mrf.mxu1  ;;  %v3962_v19 = vpop.f32.mrf.mxu0 }
 0x7f2   :  { %v3941_v26 = vadd.f32 %v3940_v15, %v3939_v11  ;;  %v3350_v31 = vadd.f32 %v3960_v28, %v3309_v25  ;;  %v3963_v38 = vadd.f32 %v3962_v19, %v3961_v24 }
 0x7f4   :  { %v3312_v32 = vadd.f32 %v3941_v26, %v3271_v27 }
 0x7f6   :  { %v3353_v42 = vadd.f32 %v3963_v38, %v3312_v32 }
 0x80b   :  { %v3980_v56 = vpop.f32.mrf.mxu1  ;;  %v4002_v49 = vpop.f32.mrf.mxu0 }
 0x80d   :  { %v3981_v29 = vpop.f32.mrf.mxu1  ;;  %v4003_v30 = vpop.f32.mrf.mxu0 }
 0x80e   :  { %v3982_v34 = vadd.f32 %v3981_v29, %v3980_v56  ;;  %v4004_v40 = vadd.f32 %v4003_v30, %v4002_v49 }
 0x80f   :  { %v3983_v35 = vpop.f32.mrf.mxu1  ;;  %v4005_v37 = vpop.f32.mrf.mxu0 }
 0x810   :  { %v3391_v39 = vadd.f32 %v3982_v34, %v3350_v31 }
 0x811   :  { %v3984_v20 = vpop.f32.mrf.mxu1  ;;  %v4006_v41 = vpop.f32.mrf.mxu0 }
 0x812   :  { %v3432_v43 = vadd.f32 %v4004_v40, %v3391_v39  ;;  %v3985_v6 = vadd.f32 %v3984_v20, %v3983_v35  ;;  %v4007_v52 = vadd.f32 %v4006_v41, %v4005_v37 }
 0x814   :  { %v3394_v50 = vadd.f32 %v3985_v6, %v3353_v42  ;;  %v3438_v23 = vadd.f32 %v3432_v43, %v4753_v47 }
 0x816   :  { %v3435_v53 = vadd.f32 %v4007_v52, %v3394_v50  ;;  %3440 = vadd.xlane.f32.xlu0 %v3438_v23 }
 0x818   :  { %v3439_v0 = vadd.f32 %v3435_v53, %v4755_v48  ;;  %v3465_v48 = vrot.slane %v4817_v61, %v4786_v44 }
 0x81a   :  { %3442 = vadd.xlane.f32.xlu1 %v3439_v0 }
 0x89f   :  { %v3441_v10 = vpop.xlane.xlu0 %3440 }
 0x8a0   :  { %v3444_v54 = vmul.f32 0.0078125, %v3441_v10 }
 0x8a2   :  { %v3446_v21 = vsub.f32 %v3438_v23, %v3444_v54 }
 0x8a3   :  { %v3443_v55 = vpop.xlane.xlu1 %3442 }
 0x8a4   :  { %v3445_v57 = vmul.f32 0.0078125, %v3443_v55  ;;  %v3448_v58 = vmul.f32 %v3446_v21, %v3446_v21 }
 0x8a6   :  { %v3447_v59 = vsub.f32 %v3439_v0, %v3445_v57  ;;  %3450 = vadd.xlane.f32.xlu0 %v3448_v58 }
 0x8a8   :  { %v3449_v60 = vmul.f32 %v3447_v59, %v3447_v59 }
 0x8aa   :  { %3452 = vadd.xlane.f32.xlu1 %v3449_v60 }
 0x92f   :  { %v3451_v62 = vpop.xlane.xlu0 %3450 }
 0x930   :  { %v3454_v63 = vmul.f32 0.0078125, %v3451_v62 }
 0x932   :  { %v3456_v1 = vadd.f32 1e-05, %v3454_v63 }
 0x933   :  { %v3453_v2 = vpop.xlane.xlu1 %3452 }
 0x934   :  { %4302 = vrsqrt.f32 %v3456_v1  ;;  %v3455_v47 = vmul.f32 0.0078125, %v3453_v2 }
 0x936   :  { %v3457_v3 = vadd.f32 1e-05, %v3455_v47 }
 0x938   :  { %4304 = vrsqrt.f32 %v3457_v3 }
 0x941   :  { %v4303_v4 = vpop.eup %4302 }
 0x942   :  { %v3460_v16 = vmul.f32 %v4303_v4, %v3446_v21 }
 0x944   :  { %v3466_v7 = vmul.f32 %v3465_v48, %v3460_v16 }
 0x945   :  { %v4305_v46 = vpop.eup %4304 }
 0x946   :  { %v3461_v9 = vmul.f32 %v4305_v46, %v3447_v59  ;;  %v3472_v22 = vadd.f32 %v3787_v5, %v3466_v7 }
 0x948   :  { %v3467_v17 = vmul.f32 %v3465_v48, %v3461_v9  ;;  %3474 = vst [vmem:[#allocation17] sm:$0xff] %v3472_v22 }
 0x94a   :  { %v3473_v11 = vadd.f32 %v3787_v5, %v3467_v17 }
 0x94c   :  { %3475 = vst [vmem:[#allocation17 + $0x8] sm:$0xff] %v3473_v11 }
 0x94d   :  { %4498 = shalt.err (!%p4495_p7)
}
 0x94e   :  { %3487 = dma.vmem_to_hbm [thread:$0]  %s3482_s8, 256, %s4840_s9, [#allocation4], %s4527_s30, %s4527_s30, %s4528_s10  }
 0x94f   :  { %4517 = dma.done.wait [#allocation4], 256  }
 0x950   :  { %4518 = vsyncadd [#allocation4], 4294967040 }
 0x951   :  { %3491 = vsyncpa [#allocation3], 1 }
 0x952   :  { %3492 = vsyncpa [#allocation6], 1 }
 0x953   :  { %3493 = vsyncpa [#allocation9], 1 }
 0x954   :  { %3494 = vsyncpa [#allocation12], 1 }
 0x955   :  { %3495 = vsyncpa [#allocation15], 1 }
 0x956   :  { %3496 = vsyncpa [#allocation4], 1 }

</bundles_post_ra>
